<compile_context>
chip_gen: v7x
topology: tpu7x:2x2x1
jax: 0.10.0
libtpu: 0.0.40
codegen_flags: <defaults>
</compile_context>

<pallas_src>
import functools

import jax
import jax.numpy as jnp
from jax.experimental import pallas as pl
from jax.experimental.pallas import tpu as pltpu


# ----------------------------- phase 1: conv + stats ------------------------------ #
def _conv_stats_kernel(x_ref, w_ref, conv_ref, stats_ref, col_ref, *,
                       TH, W, Cin, KH, KW):
    """One (batch, row-tile) step: wide im2col gather -> one MXU matmul -> conv + stats."""
    r = pl.program_id(1)
    row0 = pl.multiple_of(r * TH, TH)          # first output row of this tile
    KWC = KW * Cin
    TM = TH * W

    # im2col gather, one WIDE store per kernel row kh: build the (TH, W, KW*Cin) strip by
    # lane-concatenating the KW shifted patches, then store it once.  KH stores of width
    # KW*Cin instead of KH*KW stores of width Cin keeps pressure off the vector-store slot.
    for kh in range(KH):
        strip = x_ref[0, pl.ds(row0 + kh, TH), :, :]             # (TH, W+KW-1, Cin) bf16
        wide = jnp.concatenate([strip[:, kw:kw + W, :] for kw in range(KW)], axis=2)
        col_ref[:, kh * KWC:(kh + 1) * KWC] = wide.reshape(TM, KWC)

    # Single fused matmul on the MXU: bf16 x bf16 -> f32 accumulation, K = KH*KW*Cin.
    acc = jnp.dot(col_ref[...], w_ref[...], preferred_element_type=jnp.float32)

    # Store the conv block as bf16 (halves the write+read traffic of the conv slab).
    conv_ref[0] = acc.astype(conv_ref.dtype)

    # Single-pass BN statistics.  Re-read the stored block (plentiful vld slots) instead of
    # keeping the f32 acc live through the reductions; two direct row stores (no concat).
    c = conv_ref[0].astype(jnp.float32)                          # (TM, Cout)
    stats_ref[0, 0, 0:1, :] = jnp.sum(c, axis=0, keepdims=True)
    stats_ref[0, 0, 1:2, :] = jnp.sum(c * c, axis=0, keepdims=True)


# --------------------------- phase 2: BN apply + ReLU ------------------------------ #
def _bn_relu_kernel(conv_ref, scale_ref, shift_ref, out_ref):
    """Streaming BN-affine + ReLU; transposes in-kernel and writes NCHW f32 directly."""
    y = conv_ref[0].astype(jnp.float32) * scale_ref[...] + shift_ref[...]   # (TM2, Cout)
    y = jnp.maximum(y, 0.0)
    # (TM2, Cout) -> (Cout, TM2) on the XLU (idle in this HBM-bound kernel); removes a
    # full post-kernel XLA transpose pass over the output.
    out_ref[0] = jnp.transpose(y)


# ----------------------------------- tiling helpers -------------------------------- #
def _pick_row_tile(H, W, cap_rows):
    """Phase-1 TH: TH | H, TH*W <= cap_rows and TH*W % 8 == 0 (8,128-rule safe)."""
    divisors = [t for t in range(1, H + 1) if H % t == 0]
    ok = [t for t in divisors if (t * W) % 8 == 0]
    if not ok:
        return H                      # full-extent block is always a legal block shape
    fit = [t for t in ok if t * W <= cap_rows]
    return max(fit) if fit else min(ok)


def _pick_bn_tile(HW, cap_rows=2048):
    """Phase-2 row tile: largest multiple of 128 dividing HW (capped), else full HW."""
    best = 0
    for t in range(128, min(HW, cap_rows) + 1, 128):
        if HW % t == 0:
            best = t
    return best if best else HW


@functools.partial(jax.jit, static_argnames=("eps", "block_rows"))
def conv_batch_norm(x_nchw, weight, bias, gamma, beta, *, eps=1e-5, block_rows=512):
    """Forward of ConvBatchNorm: Conv2d(k, pad=k//2) -> BatchNorm2d(batch stats) -> ReLU.

    x_nchw: (N, Cin, H, W); weight: (Cout, Cin, KH, KW); bias/gamma/beta: (Cout,).
    The conv bias cancels exactly against the training-mode BN mean subtraction.
    """
    del bias
    N, Cin, H, W = x_nchw.shape
    Cout, _, KH, KW = weight.shape
    pad = KH // 2
    Kdim = KH * KW * Cin
    HW = H * W
    rows = N * HW

    TH = _pick_row_tile(H, W, block_rows)        # phase-1 rows per tile (~256-512 target)
    R = H // TH
    TM = TH * W
    TM2 = _pick_bn_tile(HW)                      # phase-2 rows per tile (>=512 when possible)

    # ---------------- layout glue (plain XLA): NCHW -> NHWC, pad, bf16 ----------------
    x_nhwc = jnp.transpose(x_nchw, (0, 2, 3, 1))
    x_pad = jnp.pad(x_nhwc, ((0, 0), (pad, pad), (pad, pad), (0, 0))).astype(jnp.bfloat16)
    Hp, Wp = H + 2 * pad, W + 2 * pad
    # (Cout, Cin, KH, KW) -> (KH*KW*Cin, Cout); NO channel padding (unpadded conv slab).
    w2 = jnp.transpose(weight, (2, 3, 1, 0)).reshape(Kdim, Cout).astype(jnp.bfloat16)

    # ------------------------ generation-aware VMEM budget ----------------------------
    try:
        vmem_cap = int(getattr(pltpu.get_tpu_info(), "vmem_capacity_bytes", 128 * 2**20))
    except Exception:
        vmem_cap = 128 * 2**20                   # v5e/v6e physical VMEM
    per_step = (Hp * Wp * Cin * 2 + TM * Cout * 2 + TM * Kdim * 2
                + Kdim * Cout * 2 + 2 * Cout * 4 + TM2 * Cout * 6)
    vmem_limit = int(min(int(0.75 * vmem_cap), max(32 * 2**20, 4 * per_step)))

    # ------------------------------ phase 1 pallas_call --------------------------------
    kernel1 = functools.partial(_conv_stats_kernel, TH=TH, W=W, Cin=Cin, KH=KH, KW=KW)
    conv_out, stats = pl.pallas_call(
        kernel1,
        grid=(N, R),
        in_specs=[
            # Full padded image of one batch element; r-invariant block index => the
            # pipeline DMAs it once per n and keeps it resident across row tiles.
            # TODO(synk): for very large images on v7x (64 MiB VMEM), bound this residency
            # via pl.Buffered(1) / manual halo DMA instead of double-buffering the image.
            pl.BlockSpec((1, Hp, Wp, Cin), lambda n, r: (n, 0, 0, 0)),
            pl.BlockSpec((Kdim, Cout), lambda n, r: (0, 0)),
        ],
        out_specs=[
            pl.BlockSpec((1, TM, Cout), lambda n, r: (n, r, 0)),
            pl.BlockSpec((1, 1, 2, Cout), lambda n, r: (n, r, 0, 0)),
        ],
        out_shape=[
            jax.ShapeDtypeStruct((N, HW, Cout), jnp.bfloat16),    # unpadded bf16 conv slab
            jax.ShapeDtypeStruct((N, R, 2, Cout), jnp.float32),   # per-tile sum / sumsq
        ],
        scratch_shapes=[pltpu.VMEM((TM, Kdim), jnp.bfloat16)],
        compiler_params=pltpu.CompilerParams(
            # Row tiles write disjoint conv/stats blocks -> both axes are independent
            # (lets v7x shard the row-tile axis across its two TensorCores).
            dimension_semantics=("parallel", "parallel"),
            vmem_limit_bytes=vmem_limit),
        cost_estimate=pl.CostEstimate(
            flops=2 * rows * Kdim * Cout, transcendentals=0,
            bytes_accessed=(x_pad.size * 2 + w2.size * 2
                            + rows * Cout * 2 + N * R * 2 * Cout * 4)),
    )(x_pad, w2)

    # ------------------- tiny O(Cout) stats finalization (wrapper) --------------------
    totals = jnp.sum(stats, axis=(0, 1))                  # (2, Cout) f32
    mean = totals[0] / float(rows)
    # TODO(synk): single-pass E[x^2]-E[x]^2 can lose precision for very large N*H*W;
    # switch to per-tile mean-shifted partials if tighter-than-1e-2 accuracy is needed.
    var = jnp.maximum(totals[1] / float(rows) - mean * mean, 0.0)
    inv_std = jax.lax.rsqrt(var + eps)
    g = gamma.astype(jnp.float32)
    scale = (g * inv_std).reshape(1, Cout)
    shift = (beta.astype(jnp.float32) - mean * g * inv_std).reshape(1, Cout)

    # ------------------------------ phase 2 pallas_call --------------------------------
    out_nchw = pl.pallas_call(
        _bn_relu_kernel,
        grid=(N, HW // TM2),
        in_specs=[
            pl.BlockSpec((1, TM2, Cout), lambda n, j: (n, j, 0)),
            pl.BlockSpec((1, Cout), lambda n, j: (0, 0)),
            pl.BlockSpec((1, Cout), lambda n, j: (0, 0)),
        ],
        out_specs=pl.BlockSpec((1, Cout, TM2), lambda n, j: (n, 0, j)),
        out_shape=jax.ShapeDtypeStruct((N, Cout, HW), jnp.float32),
        compiler_params=pltpu.CompilerParams(
            dimension_semantics=("parallel", "parallel"),
            vmem_limit_bytes=vmem_limit),
        cost_estimate=pl.CostEstimate(
            flops=3 * rows * Cout, transcendentals=0,
            bytes_accessed=rows * Cout * 2 + rows * Cout * 4 + 4 * Cout * 4),
    )(conv_out, scale, shift)

    # Trailing-dim split only -> free reshape; no un-pad / transpose HBM pass.
    return out_nchw.reshape(N, Cout, H, W)


def _reference(x_nchw, weight, bias, gamma, beta, eps=1e-5):
    """Pure-JAX f32 reference matching PyTorch ConvBatchNorm.forward (training-mode BN)."""
    pad = weight.shape[2] // 2
    y = jax.lax.conv_general_dilated(
        x_nchw.astype(jnp.float32), weight.astype(jnp.float32),
        window_strides=(1, 1), padding=((pad, pad), (pad, pad)),
        dimension_numbers=("NCHW", "OIHW", "NCHW"))
    y = y + bias.reshape(1, -1, 1, 1)
    mean = jnp.mean(y, axis=(0, 2, 3), keepdims=True)
    var = jnp.mean((y - mean) ** 2, axis=(0, 2, 3), keepdims=True)
    y = (y - mean) / jnp.sqrt(var + eps)
    y = y * gamma.reshape(1, -1, 1, 1) + beta.reshape(1, -1, 1, 1)
    return jnp.maximum(y, 0.0)


if __name__ == "__main__":
    key = jax.random.PRNGKey(0)
    k_x, k_w, k_b, k_g, k_be = jax.random.split(key, 5)

    N, Cin, H, W = 2, 4, 16, 16
    Cout, KH, KW = 8, 3, 3

    x = jax.random.normal(k_x, (N, Cin, H, W), dtype=jnp.float32)
    # Deterministic parameter init (synthetic; PyTorch-like scale).
    fan_in = Cin * KH * KW
    bound = 1.0 / (fan_in ** 0.5)
    weight = jax.random.uniform(k_w, (Cout, Cin, KH, KW), jnp.float32, -bound, bound)
    bias = jax.random.uniform(k_b, (Cout,), jnp.float32, -bound, bound)
    gamma = 1.0 + 0.1 * jax.random.normal(k_g, (Cout,), dtype=jnp.float32)
    beta = 0.1 * jax.random.normal(k_be, (Cout,), dtype=jnp.float32)

    out = conv_batch_norm(x, weight, bias, gamma, beta)
    out = jax.block_until_ready(out)

    ref = _reference(x, weight, bias, gamma, beta)
    assert out.shape == (N, Cout, H, W)
    # bf16 MXU matmul (f32 accumulation) + bf16 conv slab => ~1% slack vs f32 reference.
    err = float(jnp.max(jnp.abs(out - ref)))
    assert jnp.allclose(out, ref, atol=3e-2, rtol=3e-2), err

    print("KERNEL_OK")
</pallas_src>

<mosaic_0001>
module attributes {stable_mosaic.version = 11 : i64} {
  func.func @_bn_relu_kernel(%arg0: i32, %arg1: i32, %arg2: memref<1x256x8xbf16, #tpu.memory_space<vmem>>, %arg3: memref<1x8xf32, #tpu.memory_space<vmem>>, %arg4: memref<1x8xf32, #tpu.memory_space<vmem>>, %arg5: memref<1x8x256xf32, #tpu.memory_space<vmem>>) attributes {dimension_semantics = [#tpu.dimension_semantics<parallel>, #tpu.dimension_semantics<parallel>], iteration_bounds = array<i64: 2, 1>, scalar_prefetch = 0 : i64, scratch_operands = 0 : i64, tpu.core_type = #tpu.core_type<tc>, window_params = [{transform_indices = @transform_0, window_bounds = array<i64: 1, 256, 8>}, {pipeline_mode = #tpu.pipeline_mode<synchronous>, transform_indices = @transform_1, window_bounds = array<i64: 1, 8>}, {pipeline_mode = #tpu.pipeline_mode<synchronous>, transform_indices = @transform_2, window_bounds = array<i64: 1, 8>}, {transform_indices = @transform_3, window_bounds = array<i64: 1, 8, 256>}]} {
    %c0 = arith.constant 0 : index
    %c0_0 = arith.constant 0 : index
    %c0_1 = arith.constant 0 : index
    %0 = vector.load %arg2[%c0, %c0_0, %c0_1] : memref<1x256x8xbf16, #tpu.memory_space<vmem>>, vector<1x256x8xbf16>
    %1 = vector.shape_cast %0 : vector<1x256x8xbf16> to vector<256x8xbf16>
    %2 = arith.extf %1 : vector<256x8xbf16> to vector<256x8xf32>
    %c0_2 = arith.constant 0 : index
    %c0_3 = arith.constant 0 : index
    %3 = vector.load %arg3[%c0_2, %c0_3] : memref<1x8xf32, #tpu.memory_space<vmem>>, vector<1x8xf32>
    %4 = vector.broadcast %3 : vector<1x8xf32> to vector<256x8xf32>
    %5 = arith.mulf %2, %4 : vector<256x8xf32>
    %c0_4 = arith.constant 0 : index
    %c0_5 = arith.constant 0 : index
    %6 = vector.load %arg4[%c0_4, %c0_5] : memref<1x8xf32, #tpu.memory_space<vmem>>, vector<1x8xf32>
    %7 = vector.broadcast %6 : vector<1x8xf32> to vector<256x8xf32>
    %8 = arith.addf %5, %7 : vector<256x8xf32>
    %cst = arith.constant 0.000000e+00 : f32
    %9 = vector.broadcast %cst : f32 to vector<256x8xf32>
    %10 = arith.maximumf %8, %9 : vector<256x8xf32>
    %11 = tpu.transpose %10, [1, 0] : vector<256x8xf32> -> vector<8x256xf32>
    %c0_6 = arith.constant 0 : index
    %c0_7 = arith.constant 0 : index
    %c0_8 = arith.constant 0 : index
    %12 = vector.load %arg5[%c0_6, %c0_7, %c0_8] : memref<1x8x256xf32, #tpu.memory_space<vmem>>, vector<1x8x256xf32>
    %13 = vector.shape_cast %12 : vector<1x8x256xf32> to vector<8x256xf32>
    %14 = vector.shape_cast %11 : vector<8x256xf32> to vector<1x8x256xf32>
    tpu.vector_store %arg5[%c0_6, %c0_7, %c0_8], %14 {strides = array<i32>} : memref<1x8x256xf32, #tpu.memory_space<vmem>>, vector<1x8x256xf32>,
    return
  }
  func.func @transform_0(%arg0: i32, %arg1: i32) -> (i32, i32, i32) {
    %c0_i32 = arith.constant 0 : i32
    %c0_i32_0 = arith.constant 0 : i32
    return %arg0, %arg1, %c0_i32 : i32, i32, i32
  }
  func.func @transform_1(%arg0: i32, %arg1: i32) -> (i32, i32) {
    %c0_i32 = arith.constant 0 : i32
    %c0_i32_0 = arith.constant 0 : i32
    %c0_i32_1 = arith.constant 0 : i32
    return %c0_i32, %c0_i32_0 : i32, i32
  }
  func.func @transform_2(%arg0: i32, %arg1: i32) -> (i32, i32) {
    %c0_i32 = arith.constant 0 : i32
    %c0_i32_0 = arith.constant 0 : i32
    %c0_i32_1 = arith.constant 0 : i32
    return %c0_i32, %c0_i32_0 : i32, i32
  }
  func.func @transform_3(%arg0: i32, %arg1: i32) -> (i32, i32, i32) {
    %c0_i32 = arith.constant 0 : i32
    %c0_i32_0 = arith.constant 0 : i32
    return %arg0, %c0_i32, %arg1 : i32, i32, i32
  }
}

module attributes {stable_mosaic.version = 11 : i64} {
  func.func @_conv_stats_kernel(%arg0: i32, %arg1: i32, %arg2: memref<1x18x18x4xbf16, #tpu.memory_space<vmem>>, %arg3: memref<36x8xbf16, #tpu.memory_space<vmem>>, %arg4: memref<1x256x8xbf16, #tpu.memory_space<vmem>>, %arg5: memref<1x1x2x8xf32, #tpu.memory_space<vmem>>, %arg6: memref<256x36xbf16, #tpu.memory_space<vmem>>) attributes {dimension_semantics = [#tpu.dimension_semantics<parallel>, #tpu.dimension_semantics<parallel>], iteration_bounds = array<i64: 2, 1>, scalar_prefetch = 0 : i64, scratch_operands = 1 : i64, tpu.core_type = #tpu.core_type<tc>, window_params = [{transform_indices = @transform_0, window_bounds = array<i64: 1, 18, 18, 4>}, {pipeline_mode = #tpu.pipeline_mode<synchronous>, transform_indices = @transform_1, window_bounds = array<i64: 36, 8>}, {transform_indices = @transform_2, window_bounds = array<i64: 1, 256, 8>}, {transform_indices = @transform_3, window_bounds = array<i64: 1, 1, 2, 8>}]} {
    %c16_i32 = arith.constant 16 : i32
    %0 = arith.muli %arg1, %c16_i32 : i32
    %1 = tpu.assume_multiple %0, 16 : i32
    %c0_i32 = arith.constant 0 : i32
    %2 = arith.addi %1, %c0_i32 : i32
    %c0 = arith.constant 0 : index
    %3 = arith.index_cast %2 : i32 to index
    %c0_0 = arith.constant 0 : index
    %c0_1 = arith.constant 0 : index
    %4 = vector.load %arg2[%c0, %3, %c0_0, %c0_1] : memref<1x18x18x4xbf16, #tpu.memory_space<vmem>>, vector<1x16x18x4xbf16>
    %5 = vector.shape_cast %4 : vector<1x16x18x4xbf16> to vector<16x18x4xbf16>
    %6 = vector.extract_strided_slice %5 {offsets = [0, 0, 0], sizes = [16, 16, 4], strides = [1, 1, 1]} : vector<16x18x4xbf16> to vector<16x16x4xbf16>
    %7 = vector.extract_strided_slice %5 {offsets = [0, 1, 0], sizes = [16, 16, 4], strides = [1, 1, 1]} : vector<16x18x4xbf16> to vector<16x16x4xbf16>
    %8 = vector.extract_strided_slice %5 {offsets = [0, 2, 0], sizes = [16, 16, 4], strides = [1, 1, 1]} : vector<16x18x4xbf16> to vector<16x16x4xbf16>
    %9 = tpu.concatenate %6, %7, %8 in 2 : vector<16x16x4xbf16>, vector<16x16x4xbf16>, vector<16x16x4xbf16> -> vector<16x16x12xbf16>
    %10 = vector.shape_cast %9 : vector<16x16x12xbf16> to vector<256x12xbf16>
    %c0_2 = arith.constant 0 : index
    %c0_3 = arith.constant 0 : index
    %11 = vector.load %arg6[%c0_2, %c0_3] : memref<256x36xbf16, #tpu.memory_space<vmem>>, vector<256x12xbf16>
    tpu.vector_store %arg6[%c0_2, %c0_3], %10 {strides = array<i32>} : memref<256x36xbf16, #tpu.memory_space<vmem>>, vector<256x12xbf16>,
    %c1_i32 = arith.constant 1 : i32
    %12 = arith.addi %1, %c1_i32 : i32
    %c0_4 = arith.constant 0 : index
    %13 = arith.index_cast %12 : i32 to index
    %c0_5 = arith.constant 0 : index
    %c0_6 = arith.constant 0 : index
    %14 = vector.load %arg2[%c0_4, %13, %c0_5, %c0_6] : memref<1x18x18x4xbf16, #tpu.memory_space<vmem>>, vector<1x16x18x4xbf16>
    %15 = vector.shape_cast %14 : vector<1x16x18x4xbf16> to vector<16x18x4xbf16>
    %16 = vector.extract_strided_slice %15 {offsets = [0, 0, 0], sizes = [16, 16, 4], strides = [1, 1, 1]} : vector<16x18x4xbf16> to vector<16x16x4xbf16>
    %17 = vector.extract_strided_slice %15 {offsets = [0, 1, 0], sizes = [16, 16, 4], strides = [1, 1, 1]} : vector<16x18x4xbf16> to vector<16x16x4xbf16>
    %18 = vector.extract_strided_slice %15 {offsets = [0, 2, 0], sizes = [16, 16, 4], strides = [1, 1, 1]} : vector<16x18x4xbf16> to vector<16x16x4xbf16>
    %19 = tpu.concatenate %16, %17, %18 in 2 : vector<16x16x4xbf16>, vector<16x16x4xbf16>, vector<16x16x4xbf16> -> vector<16x16x12xbf16>
    %20 = vector.shape_cast %19 : vector<16x16x12xbf16> to vector<256x12xbf16>
    %c0_7 = arith.constant 0 : index
    %c12 = arith.constant 12 : index
    %21 = vector.load %arg6[%c0_7, %c12] : memref<256x36xbf16, #tpu.memory_space<vmem>>, vector<256x12xbf16>
    tpu.vector_store %arg6[%c0_7, %c12], %20 {strides = array<i32>} : memref<256x36xbf16, #tpu.memory_space<vmem>>, vector<256x12xbf16>,
    %c2_i32 = arith.constant 2 : i32
    %22 = arith.addi %1, %c2_i32 : i32
    %c0_8 = arith.constant 0 : index
    %23 = arith.index_cast %22 : i32 to index
    %c0_9 = arith.constant 0 : index
    %c0_10 = arith.constant 0 : index
    %24 = vector.load %arg2[%c0_8, %23, %c0_9, %c0_10] : memref<1x18x18x4xbf16, #tpu.memory_space<vmem>>, vector<1x16x18x4xbf16>
    %25 = vector.shape_cast %24 : vector<1x16x18x4xbf16> to vector<16x18x4xbf16>
    %26 = vector.extract_strided_slice %25 {offsets = [0, 0, 0], sizes = [16, 16, 4], strides = [1, 1, 1]} : vector<16x18x4xbf16> to vector<16x16x4xbf16>
    %27 = vector.extract_strided_slice %25 {offsets = [0, 1, 0], sizes = [16, 16, 4], strides = [1, 1, 1]} : vector<16x18x4xbf16> to vector<16x16x4xbf16>
    %28 = vector.extract_strided_slice %25 {offsets = [0, 2, 0], sizes = [16, 16, 4], strides = [1, 1, 1]} : vector<16x18x4xbf16> to vector<16x16x4xbf16>
    %29 = tpu.concatenate %26, %27, %28 in 2 : vector<16x16x4xbf16>, vector<16x16x4xbf16>, vector<16x16x4xbf16> -> vector<16x16x12xbf16>
    %30 = vector.shape_cast %29 : vector<16x16x12xbf16> to vector<256x12xbf16>
    %c0_11 = arith.constant 0 : index
    %c24 = arith.constant 24 : index
    %31 = vector.load %arg6[%c0_11, %c24] : memref<256x36xbf16, #tpu.memory_space<vmem>>, vector<256x12xbf16>
    tpu.vector_store %arg6[%c0_11, %c24], %30 {strides = array<i32>} : memref<256x36xbf16, #tpu.memory_space<vmem>>, vector<256x12xbf16>,
    %c0_12 = arith.constant 0 : index
    %c0_13 = arith.constant 0 : index
    %32 = vector.load %arg6[%c0_12, %c0_13] : memref<256x36xbf16, #tpu.memory_space<vmem>>, vector<256x36xbf16>
    %c0_14 = arith.constant 0 : index
    %c0_15 = arith.constant 0 : index
    %33 = vector.load %arg3[%c0_14, %c0_15] : memref<36x8xbf16, #tpu.memory_space<vmem>>, vector<36x8xbf16>
    %cst = arith.constant dense<0.000000e+00> : vector<256x8xf32>
    %34 = tpu.matmul %32, %33, %cst {dimension_numbers = #tpu.dot_dimension_numbers<[1], [0], [0], [1], [0, 0, 1, 1], [], []>} : vector<256x36xbf16>, vector<36x8xbf16>, vector<256x8xf32> -> vector<256x8xf32>
    %35 = arith.truncf %34 : vector<256x8xf32> to vector<256x8xbf16>
    %c0_16 = arith.constant 0 : index
    %c0_17 = arith.constant 0 : index
    %c0_18 = arith.constant 0 : index
    %36 = vector.load %arg4[%c0_16, %c0_17, %c0_18] : memref<1x256x8xbf16, #tpu.memory_space<vmem>>, vector<1x256x8xbf16>
    %37 = vector.shape_cast %36 : vector<1x256x8xbf16> to vector<256x8xbf16>
    %38 = vector.shape_cast %35 : vector<256x8xbf16> to vector<1x256x8xbf16>
    tpu.vector_store %arg4[%c0_16, %c0_17, %c0_18], %38 {strides = array<i32>} : memref<1x256x8xbf16, #tpu.memory_space<vmem>>, vector<1x256x8xbf16>,
    %c0_19 = arith.constant 0 : index
    %c0_20 = arith.constant 0 : index
    %c0_21 = arith.constant 0 : index
    %39 = vector.load %arg4[%c0_19, %c0_20, %c0_21] : memref<1x256x8xbf16, #tpu.memory_space<vmem>>, vector<1x256x8xbf16>
    %40 = vector.shape_cast %39 : vector<1x256x8xbf16> to vector<256x8xbf16>
    %41 = arith.extf %40 : vector<256x8xbf16> to vector<256x8xf32>
    %cst_22 = arith.constant dense<0.000000e+00> : vector<8xf32>
    %42 = vector.multi_reduction <add>, %41, %cst_22 [0] : vector<256x8xf32> to vector<8xf32>
    %43 = vector.shape_cast %42 : vector<8xf32> to vector<1x8xf32>
    %c0_23 = arith.constant 0 : index
    %c0_24 = arith.constant 0 : index
    %c0_25 = arith.constant 0 : index
    %c0_26 = arith.constant 0 : index
    %44 = vector.load %arg5[%c0_23, %c0_24, %c0_25, %c0_26] : memref<1x1x2x8xf32, #tpu.memory_space<vmem>>, vector<1x1x1x8xf32>
    %45 = vector.shape_cast %44 : vector<1x1x1x8xf32> to vector<1x8xf32>
    %46 = vector.shape_cast %43 : vector<1x8xf32> to vector<1x1x1x8xf32>
    tpu.vector_store %arg5[%c0_23, %c0_24, %c0_25, %c0_26], %46 {strides = array<i32>} : memref<1x1x2x8xf32, #tpu.memory_space<vmem>>, vector<1x1x1x8xf32>,
    %47 = arith.mulf %41, %41 : vector<256x8xf32>
    %cst_27 = arith.constant dense<0.000000e+00> : vector<8xf32>
    %48 = vector.multi_reduction <add>, %47, %cst_27 [0] : vector<256x8xf32> to vector<8xf32>
    %49 = vector.shape_cast %48 : vector<8xf32> to vector<1x8xf32>
    %c0_28 = arith.constant 0 : index
    %c0_29 = arith.constant 0 : index
    %c1 = arith.constant 1 : index
    %c0_30 = arith.constant 0 : index
    %50 = vector.load %arg5[%c0_28, %c0_29, %c1, %c0_30] : memref<1x1x2x8xf32, #tpu.memory_space<vmem>>, vector<1x1x1x8xf32>
    %51 = vector.shape_cast %50 : vector<1x1x1x8xf32> to vector<1x8xf32>
    %52 = vector.shape_cast %49 : vector<1x8xf32> to vector<1x1x1x8xf32>
    tpu.vector_store %arg5[%c0_28, %c0_29, %c1, %c0_30], %52 {strides = array<i32>} : memref<1x1x2x8xf32, #tpu.memory_space<vmem>>, vector<1x1x1x8xf32>,
    return
  }
  func.func @transform_0(%arg0: i32, %arg1: i32) -> (i32, i32, i32, i32) {
    %c0_i32 = arith.constant 0 : i32
    %c0_i32_0 = arith.constant 0 : i32
    %c0_i32_1 = arith.constant 0 : i32
    %c0_i32_2 = arith.constant 0 : i32
    return %arg0, %c0_i32, %c0_i32_0, %c0_i32_1 : i32, i32, i32, i32
  }
  func.func @transform_1(%arg0: i32, %arg1: i32) -> (i32, i32) {
    %c0_i32 = arith.constant 0 : i32
    %c0_i32_0 = arith.constant 0 : i32
    %c0_i32_1 = arith.constant 0 : i32
    return %c0_i32, %c0_i32_0 : i32, i32
  }
  func.func @transform_2(%arg0: i32, %arg1: i32) -> (i32, i32, i32) {
    %c0_i32 = arith.constant 0 : i32
    %c0_i32_0 = arith.constant 0 : i32
    return %arg0, %arg1, %c0_i32 : i32, i32, i32
  }
  func.func @transform_3(%arg0: i32, %arg1: i32) -> (i32, i32, i32, i32) {
    %c0_i32 = arith.constant 0 : i32
    %c0_i32_0 = arith.constant 0 : i32
    %c0_i32_1 = arith.constant 0 : i32
    return %arg0, %arg1, %c0_i32, %c0_i32_0 : i32, i32, i32, i32
  }
}

</mosaic_0001>

<bundles_post_ra>
// kernel: conv_batch_norm.3
= control target key start
LH: loop header
LB: loop body
LE: loop exit
PB: predicated region body
PF: predicated region fallthrough
CT: control target
= control target key end

     0   :  { %s699_s12 = smov 0   ;;  %s701_s13 = smov 0   ;;  %s828_s0 = inlined_call_operand.vmem [shape: bf16[2,256,8], index: 0, kind: input, shape index: {}]   ;;  %s829_s1 = inlined_call_operand.vmem [shape: f32[1,8], index: 1, kind: input, shape index: {}]   ;;  %s830_s2 = inlined_call_operand.vmem [shape: f32[1,8], index: 2, kind: input, shape index: {}]   ;;  %s831_s3 = inlined_call_operand.vmem [shape: f32[2,8,256], index: 3, kind: output, shape index: {}]  }
   0x1   :  { %s703_s14 = smov 0  }
   0x2 LB: > { %s25_s15 = sadd.s32 1, %s673_s13  ;;  %p541_p0 = scmp.ge.s32.totalorder %s677_s14, 1  ;;  %s677_s14 = sphi %s703_s14, %s13_s14   ;;  %s673_s13 = sphi %s701_s13, %s833_s13   ;;  %s669_s12 = sphi %s699_s12, %s832_s12  }
   0x3   : > { %p27_p1 = scmp.ge.s32.totalorder %s25_s15, 2  ;;  %p158_p2 = scmp.lt.s32.totalorder %s677_s14, 3 }
   0x5   : > { %s835_s15 = smov (%p27_p1, %s25_s15), 0  ;;  %p159_p3 = pnand %p541_p0, %p158_p2 }
   0x6   : > { %p191_p4 = scmp.lt.s32.totalorder (!%p159_p3), %s669_s12, 1  ;;  %v728_v0 = vld [vmem:[%s829_s1] ss:$0 sm:$0xff] (!%p159_p3) }
   0x7   : > { %162 = sbr.rel (%p159_p3) target bundleno = 157 (0x9d), region = 32  ;;  %v737_v9 = vld [vmem:[%s830_s2] ss:$0 sm:$0xff] (!%p159_p3) }
   0xe   : > { %s837_s12 = smov (!%p191_p4, %s669_s12), 1 }
   0xf   : > { %s550_s16 = sshll.u32 %s837_s12, 7  ;;  %s551_s24 = sshll.u32 %s837_s12, 4 }
  0x10   : > { %s723_s19 = scalar_lea.vmem %s828_s0, %s550_s16  ;;  %s208_s27 = scalar_lea.vmem %s831_s3, %s551_s24 }
  0x11   : > { %v623_v1 = vld [vmem:[%s723_s19 + $0x40] sm:$0xff]   ;;  %v624_v3 = vld [vmem:[%s723_s19 + $0x48] sm:$0xff]   ;;  %v625_v24 = vld [vmem:[%s723_s19 + $0x50] sm:$0xff]  }
  0x12   : > { %v553_v2 = vld [vmem:[%s723_s19] sm:$0xff]   ;;  %v586_v4 = vunpack.c.l.bf16 %v623_v1  ;;  %v587_v6 = vunpack.c.h.bf16 %v623_v1  ;;  %v616_v8 = vld [vmem:[%s723_s19 + $0x8] sm:$0xff]   ;;  %v590_v10 = vunpack.c.l.bf16 %v624_v3  ;;  %v591_v18 = vunpack.c.h.bf16 %v624_v3  ;;  %v617_v25 = vld [vmem:[%s723_s19 + $0x10] sm:$0xff]  }
  0x13   : > { %v554_v5 = vunpack.c.l.bf16 %v553_v2  ;;  %v555_v7 = vunpack.c.h.bf16 %v553_v2  ;;  %v558_v11 = vunpack.c.l.bf16 %v616_v8  ;;  %v559_v19 = vunpack.c.h.bf16 %v616_v8  ;;  %v626_v44 = vld [vmem:[%s723_s19 + $0x58] sm:$0xff]   ;;  %v627_v62 = vld [vmem:[%s723_s19 + $0x60] sm:$0xff]  }
  0x14   : > { %v297_v12 = vmul.f32 %v586_v4, %v728_v0  ;;  %v298_v14 = vmul.f32 %v587_v6, %v728_v0  ;;  %v299_v16 = vmul.f32 %v590_v10, %v728_v0  ;;  %v300_v30 = vmul.f32 %v591_v18, %v728_v0  ;;  %v618_v45 = vld [vmem:[%s723_s19 + $0x18] sm:$0xff]   ;;  %v619_v63 = vld [vmem:[%s723_s19 + $0x20] sm:$0xff]   ;;  %v628_v18 = vld [vmem:[%s723_s19 + $0x68] sm:$0xff]  }
  0x15   : > { %v281_v13 = vmul.f32 %v554_v5, %v728_v0  ;;  %v282_v15 = vmul.f32 %v555_v7, %v728_v0  ;;  %v283_v17 = vmul.f32 %v558_v11, %v728_v0  ;;  %v284_v31 = vmul.f32 %v559_v19, %v728_v0  ;;  %v620_v19 = vld [vmem:[%s723_s19 + $0x28] sm:$0xff]  }
  0x16   : > { %v336_v20 = vadd.f32 %v737_v9, %v297_v12  ;;  %v337_v22 = vadd.f32 %v737_v9, %v298_v14  ;;  %v338_v28 = vadd.f32 %v737_v9, %v299_v16  ;;  %v594_v34 = vunpack.c.l.bf16 %v625_v24 }
  0x17   : > { %v320_v21 = vadd.f32 %v737_v9, %v281_v13  ;;  %v321_v23 = vadd.f32 %v737_v9, %v282_v15  ;;  %v322_v29 = vadd.f32 %v737_v9, %v283_v17  ;;  %v562_v35 = vunpack.c.l.bf16 %v617_v25 }
  0x18   : > { %v368_v26 = vmax.f32 %v336_v20, 0.0  ;;  %v369_v32 = vmax.f32 %v337_v22, 0.0  ;;  %v370_v36 = vmax.f32 %v338_v28, 0.0  ;;  %v339_v37 = vadd.f32 %v737_v9, %v300_v30 }
  0x19   : > { %v352_v27 = vmax.f32 %v320_v21, 0.0  ;;  %v353_v33 = vmax.f32 %v321_v23, 0.0  ;;  %v323_v38 = vadd.f32 %v737_v9, %v284_v31  ;;  %v595_v39 = vunpack.c.h.bf16 %v625_v24 }
  0x1a   : > { %416 = vxpose.xlu1.b32.start [1/16] (narrow) %v368_v26, 8  ;;  %v354_v40 = vmax.f32 %v322_v29, 0.0  ;;  %v301_v41 = vmul.f32 %v594_v34, %v728_v0  ;;  %v285_v42 = vmul.f32 %v562_v35, %v728_v0  ;;  %v563_v43 = vunpack.c.h.bf16 %v617_v25 }
  0x1b   : > { %384 = vxpose.xlu0.b32.start [1/16] (narrow) %v352_v27, 8  ;;  %v371_v46 = vmax.f32 %v339_v37, 0.0  ;;  %v302_v47 = vmul.f32 %v595_v39, %v728_v0  ;;  %v598_v48 = vunpack.c.l.bf16 %v626_v44  ;;  %v566_v49 = vunpack.c.l.bf16 %v618_v45  ;;  %v621_v37 = vld [vmem:[%s723_s19 + $0x30] sm:$0xff]  }
  0x1c   : > { %v355_v50 = vmax.f32 %v323_v38, 0.0  ;;  %v340_v51 = vadd.f32 %v737_v9, %v301_v41  ;;  %v324_v52 = vadd.f32 %v737_v9, %v285_v42  ;;  %v286_v53 = vmul.f32 %v563_v43, %v728_v0 }
  0x1d   : > { %v303_v54 = vmul.f32 %v598_v48, %v728_v0  ;;  %v287_v55 = vmul.f32 %v566_v49, %v728_v0  ;;  %v599_v56 = vunpack.c.h.bf16 %v626_v44  ;;  %v567_v57 = vunpack.c.h.bf16 %v618_v45 }
  0x1e   : > { %417 = vxpose.xlu1.b32.cont [2/16] (narrow) %v369_v32, 8  ;;  %v372_v58 = vmax.f32 %v340_v51, 0.0  ;;  %v356_v59 = vmax.f32 %v324_v52, 0.0  ;;  %v341_v60 = vadd.f32 %v737_v9, %v302_v47  ;;  %v325_v61 = vadd.f32 %v737_v9, %v286_v53 }
  0x1f   : > { %385 = vxpose.xlu0.b32.cont [2/16] (narrow) %v353_v33, 8  ;;  %v342_v1 = vadd.f32 %v737_v9, %v303_v54  ;;  %v304_v2 = vmul.f32 %v599_v56, %v728_v0  ;;  %v288_v3 = vmul.f32 %v567_v57, %v728_v0  ;;  %v602_v4 = vunpack.c.l.bf16 %v627_v62  ;;  %v630_v54 = vld [vmem:[%s723_s19 + $0x78] sm:$0xff]  }
  0x20   : > { %v373_v5 = vmax.f32 %v341_v60, 0.0  ;;  %v357_v6 = vmax.f32 %v325_v61, 0.0  ;;  %v326_v7 = vadd.f32 %v737_v9, %v287_v55  ;;  %v570_v8 = vunpack.c.l.bf16 %v619_v63  ;;  %v622_v55 = vld [vmem:[%s723_s19 + $0x38] sm:$0xff]  }
  0x21   : > { %v374_v10 = vmax.f32 %v342_v1, 0.0  ;;  %v343_v11 = vadd.f32 %v737_v9, %v304_v2  ;;  %v327_v12 = vadd.f32 %v737_v9, %v288_v3  ;;  %v305_v13 = vmul.f32 %v602_v4, %v728_v0 }
  0x22   : > { %418 = vxpose.xlu1.b32.cont [3/16] (narrow) %v370_v36, 8  ;;  %v358_v14 = vmax.f32 %v326_v7, 0.0  ;;  %v289_v15 = vmul.f32 %v570_v8, %v728_v0  ;;  %v603_v16 = vunpack.c.h.bf16 %v627_v62  ;;  %v571_v17 = vunpack.c.h.bf16 %v619_v63  ;;  %v629_v36 = vld [vmem:[%s723_s19 + $0x70] sm:$0xff]  }
  0x23   : > { %386 = vxpose.xlu0.b32.cont [3/16] (narrow) %v354_v40, 8  ;;  %v375_v20 = vmax.f32 %v343_v11, 0.0  ;;  %v344_v21 = vadd.f32 %v737_v9, %v305_v13  ;;  %v606_v22 = vunpack.c.l.bf16 %v628_v18  ;;  %v574_v23 = vunpack.c.l.bf16 %v620_v19 }
  0x24   : > { %v359_v24 = vmax.f32 %v327_v12, 0.0  ;;  %v328_v25 = vadd.f32 %v737_v9, %v289_v15  ;;  %v306_v26 = vmul.f32 %v603_v16, %v728_v0  ;;  %v290_v27 = vmul.f32 %v571_v17, %v728_v0 }
  0x25   : > { %v307_v28 = vmul.f32 %v606_v22, %v728_v0  ;;  %v291_v29 = vmul.f32 %v574_v23, %v728_v0  ;;  %v607_v30 = vunpack.c.h.bf16 %v628_v18  ;;  %v575_v31 = vunpack.c.h.bf16 %v620_v19 }
  0x26   : > { %419 = vxpose.xlu1.b32.cont [4/16] (narrow) %v371_v46, 8  ;;  %v376_v32 = vmax.f32 %v344_v21, 0.0  ;;  %v360_v33 = vmax.f32 %v328_v25, 0.0  ;;  %v345_v34 = vadd.f32 %v737_v9, %v306_v26  ;;  %v329_v35 = vadd.f32 %v737_v9, %v290_v27 }
  0x27   : > { %387 = vxpose.xlu0.b32.cont [4/16] (narrow) %v355_v50, 8  ;;  %v346_v38 = vadd.f32 %v737_v9, %v307_v28  ;;  %v308_v39 = vmul.f32 %v607_v30, %v728_v0  ;;  %v292_v40 = vmul.f32 %v575_v31, %v728_v0  ;;  %v610_v41 = vunpack.c.l.bf16 %v629_v36 }
  0x28   : > { %v377_v42 = vmax.f32 %v345_v34, 0.0  ;;  %v361_v43 = vmax.f32 %v329_v35, 0.0  ;;  %v330_v44 = vadd.f32 %v737_v9, %v291_v29  ;;  %v578_v45 = vunpack.c.l.bf16 %v621_v37 }
  0x29   : > { %v378_v46 = vmax.f32 %v346_v38, 0.0  ;;  %v347_v47 = vadd.f32 %v737_v9, %v308_v39  ;;  %v331_v48 = vadd.f32 %v737_v9, %v292_v40  ;;  %v309_v49 = vmul.f32 %v610_v41, %v728_v0 }
  0x2a   : > { %420 = vxpose.xlu1.b32.cont [5/16] (narrow) %v372_v58, 8  ;;  %v362_v50 = vmax.f32 %v330_v44, 0.0  ;;  %v293_v51 = vmul.f32 %v578_v45, %v728_v0  ;;  %v611_v52 = vunpack.c.h.bf16 %v629_v36  ;;  %v579_v53 = vunpack.c.h.bf16 %v621_v37 }
  0x2b   : > { %388 = vxpose.xlu0.b32.cont [5/16] (narrow) %v356_v59, 8  ;;  %v379_v56 = vmax.f32 %v347_v47, 0.0  ;;  %v348_v57 = vadd.f32 %v737_v9, %v309_v49  ;;  %v614_v58 = vunpack.c.l.bf16 %v630_v54  ;;  %v582_v59 = vunpack.c.l.bf16 %v622_v55 }
  0x2c   : > { %v363_v60 = vmax.f32 %v331_v48, 0.0  ;;  %v332_v61 = vadd.f32 %v737_v9, %v293_v51  ;;  %v310_v62 = vmul.f32 %v611_v52, %v728_v0  ;;  %v294_v63 = vmul.f32 %v579_v53, %v728_v0 }
  0x2d   : > { %v311_v1 = vmul.f32 %v614_v58, %v728_v0  ;;  %v295_v2 = vmul.f32 %v582_v59, %v728_v0  ;;  %v615_v3 = vunpack.c.h.bf16 %v630_v54  ;;  %v583_v4 = vunpack.c.h.bf16 %v622_v55 }
  0x2e   : > { %421 = vxpose.xlu1.b32.cont [6/16] (narrow) %v373_v5, 8  ;;  %v380_v5 = vmax.f32 %v348_v57, 0.0  ;;  %v349_v7 = vadd.f32 %v737_v9, %v310_v62  ;;  %v333_v8 = vadd.f32 %v737_v9, %v294_v63 }
  0x2f   : > { %389 = vxpose.xlu0.b32.cont [6/16] (narrow) %v357_v6, 8  ;;  %v364_v6 = vmax.f32 %v332_v61, 0.0  ;;  %v296_v11 = vmul.f32 %v583_v4, %v728_v0  ;;  %v334_v15 = vadd.f32 %v737_v9, %v295_v2 }
  0x30   : > { %v381_v12 = vmax.f32 %v349_v7, 0.0  ;;  %v365_v13 = vmax.f32 %v333_v8, 0.0 }
  0x31   : > { %v366_v17 = vmax.f32 %v334_v15, 0.0  ;;  %v335_v19 = vadd.f32 %v737_v9, %v296_v11 }
  0x32   : > { %422 = vxpose.xlu1.b32.cont [7/16] (narrow) %v374_v10, 8  ;;  %v312_v10 = vmul.f32 %v615_v3, %v728_v0 }
  0x33   : > { %390 = vxpose.xlu0.b32.cont [7/16] (narrow) %v358_v14, 8  ;;  %v350_v14 = vadd.f32 %v737_v9, %v311_v1 }
  0x34   : > { %v351_v18 = vadd.f32 %v737_v9, %v312_v10 }
  0x35   : > { %v382_v16 = vmax.f32 %v350_v14, 0.0 }
  0x36   : > { %423 = vxpose.xlu1.b32.cont [8/16] (narrow) %v375_v20, 8  ;;  %v383_v0 = vmax.f32 %v351_v18, 0.0  ;;  %v367_v20 = vmax.f32 %v335_v19, 0.0 }
  0x37   : > { %391 = vxpose.xlu0.b32.cont [8/16] (narrow) %v359_v24, 8 }
  0x3a   : > { %424 = vxpose.xlu1.b32.cont [9/16] (narrow) %v376_v32, 8 }
  0x3b   : > { %392 = vxpose.xlu0.b32.cont [9/16] (narrow) %v360_v33, 8 }
  0x3e   : > { %425 = vxpose.xlu1.b32.cont [10/16] (narrow) %v377_v42, 8 }
  0x3f   : > { %393 = vxpose.xlu0.b32.cont [10/16] (narrow) %v361_v43, 8 }
  0x42   : > { %426 = vxpose.xlu1.b32.cont [11/16] (narrow) %v378_v46, 8 }
  0x43   : > { %394 = vxpose.xlu0.b32.cont [11/16] (narrow) %v362_v50, 8 }
  0x46   : > { %427 = vxpose.xlu1.b32.cont [12/16] (narrow) %v379_v56, 8 }
  0x47   : > { %395 = vxpose.xlu0.b32.cont [12/16] (narrow) %v363_v60, 8 }
  0x4a   : > { %428 = vxpose.xlu1.b32.cont [13/16] (narrow) %v380_v5, 8 }
  0x4b   : > { %396 = vxpose.xlu0.b32.cont [13/16] (narrow) %v364_v6, 8 }
  0x4e   : > { %429 = vxpose.xlu1.b32.cont [14/16] (narrow) %v381_v12, 8 }
  0x4f   : > { %397 = vxpose.xlu0.b32.cont [14/16] (narrow) %v365_v13, 8 }
  0x52   : > { %430 = vxpose.xlu1.b32.cont [15/16] (narrow) %v382_v16, 8 }
  0x53   : > { %398 = vxpose.xlu0.b32.cont [15/16] (narrow) %v366_v17, 8 }
  0x56   : > { %431 = vxpose.xlu1.b32.end [16/16] (narrow) %v383_v0, 8 }
  0x57   : > { %399 = vxpose.xlu0.b32.end [16/16] (narrow) %v367_v20, 8 }
  0x9a   : > { %v432_v21 = vpop.trf.xlu1 }
  0x9b   : > { %v400_v22 = vpop.trf.xlu0  ;;  %449 = vst [vmem:[%s208_s27 + $0x8] sm:$0xff] %v432_v21 }
  0x9c   : > { %448 = vst [vmem:[%s208_s27] sm:$0xff] %v400_v22 }
  0x9d PF: > { %s13_s14 = sadd.s32 1, %s677_s14   ;;  %s832_s12 = smov %s673_s13 }
  0x9e   : > { %p10_p5 = scmp.ge.s32.totalorder %s13_s14, 4   ;;  %s833_s13 = smov %s835_s15 }
  0xa0   :  { %12 = sbr.rel (!%p10_p5) target bundleno = 2 (0x2), region = 62 }

// kernel: conv_batch_norm.2
= control target key start
LH: loop header
LB: loop body
LE: loop exit
PB: predicated region body
PF: predicated region fallthrough
CT: control target
= control target key end

     0   :  { %s3473_s12 = smov 0   ;;  %s3475_s13 = smov 0   ;;  %s4541_s0 = inlined_call_operand.vmem [shape: bf16[2,18,18,4], index: 0, kind: input, shape index: {}]   ;;  %s4542_s1 = inlined_call_operand.vmem [shape: bf16[36,8], index: 1, kind: input, shape index: {}]   ;;  %s4543_s2 = inlined_call_operand.vmem [shape: bf16[2,256,8], index: 2, kind: output, shape index: {0}]   ;;  %s4544_s3 = inlined_call_operand.vmem [shape: f32[2,1,2,8], index: 3, kind: output, shape index: {1}]  }
   0x1   :  { %s3477_s14 = smov 0  }
   0x2 LB: > { %s26_s15 = sadd.s32 1, %s3443_s13  ;;  %p2841_p0 = scmp.ge.s32.totalorder %s3447_s14, 1  ;;  %s3447_s14 = sphi %s3477_s14, %s14_s14   ;;  %s3443_s13 = sphi %s3475_s13, %s4546_s13   ;;  %s3439_s12 = sphi %s3473_s12, %s4545_s12  }
   0x3   : > { %p28_p1 = scmp.ge.s32.totalorder %s26_s15, 2  ;;  %p156_p2 = scmp.lt.s32.totalorder %s3447_s14, 3 }
   0x5   : > { %s4548_s15 = smov (%p28_p1, %s26_s15), 0  ;;  %p157_p3 = pnand %p2841_p0, %p156_p2 }
   0x6   : > { %p191_p4 = scmp.lt.s32.totalorder (!%p157_p3), %s3439_s12, 1  ;;  %vm619_vm0 = vcmask (!%p157_p3), 1046528   ;;  %vm394_vm1 = vsmask.f32 (!%p157_p3), 7424  ;;  %s3449_s20 = smov (!%p157_p3), 8   ;;  %vm700_vm2 = vcmask (!%p157_p3), 31744  }
   0x7   : > { %160 = sbr.rel (%p157_p3) target bundleno = 649 (0x289), region = 28  ;;  %s3450_s21 = smov (!%p157_p3), 4   ;;  %vm733_vm3 = vcmask (!%p157_p3), 64512   ;;  %vm2142_vm4 = vcmask (!%p157_p3), 1041408   ;;  %vm782_vm5 = vcmask (!%p157_p3), 97280   ;;  %vm1411_vm6 = vcmask (!%p157_p3), 195680  }
   0x8   : > { %s3451_s28 = smov (!%p157_p3), 12   ;;  %s3452_s29 = smov (!%p157_p3), 24   ;;  %vm2040_vm7 = vcmask (!%p157_p3), 294080   ;;  %vm2093_vm8 = vcmask (!%p157_p3), 293888   ;;  %vm2435_vm9 = vcmask (!%p157_p3), 60416   ;;  %vm2601_vm10 = vcmask (!%p157_p3), 57344  }
   0xe   : > { %s4550_s12 = smov (!%p191_p4, %s3439_s12), 1 }
   0xf   : > { %s3268_s16 = smul.u32 216, %s4550_s12  ;;  %s3091_s30 = sshll.u32 %s4550_s12, 7 }
  0x10   : > { %s4382_s6 = scalar_lea.vmem %s4543_s2, %s3091_s30  ;;  %s2845_s7 = sshll.u32 %s4550_s12, 1 }
  0x11   : > { %s3497_s19 = scalar_lea.vmem %s4541_s0, %s3268_s16  ;;  %s212_s10 = scalar_lea.vmem %s4544_s3, %s2845_s7 }
  0x12   : > { %v3500_v0 = vld [vmem:[%s3497_s19 + $0x18] sm:$0xff]   ;;  %v3298_v1 = vld [vmem:[%s3497_s19 + $0x20] ss:$0 sps:$4 sm:$0x11]   ;;  %v3299_v2 = vld [vmem:[%s3497_s19 + $0xc] sm:$0xff]  }
  0x13   : > { %v1206_v3 = vrot.slane %v3500_v0, 1  ;;  %v1207_v4 = vrot.slane %v3298_v1, 1  ;;  %v3300_v5 = vld [vmem:[%s3497_s19 + $0x14] ss:$0 sps:$4 sm:$0x11]   ;;  %v3301_v6 = vld [vmem:[%s3497_s19 + $0x18] sm:$0xff]  }
  0x14   : > { %v1203_v7 = vrot.slane %v3299_v2, 1  ;;  %v3303_v8 = vld [vmem:[%s3497_s19 + $0x24] sm:$0xff]   ;;  %v1204_v10 = vrot.slane %v3300_v5, 1  ;;  %v3302_v11 = vld [vmem:[%s3497_s19 + $0x20] ss:$0 sps:$4 sm:$0x11]  }
  0x15   : > { %v1208_v9 = vsel %vm619_vm0, %v1206_v3, %v1207_v4  ;;  %v1832_v12 = vrot.slane %v3301_v6, 1  ;;  %v1835_v13 = vrot.slane %v3303_v8, 1  ;;  %v1833_v15 = vrot.slane %v3302_v11, 1  ;;  %v3304_v16 = vld [vmem:[%s3497_s19 + $0x2c] ss:$0 sps:$4 sm:$0x11]  }
  0x16   : > { %1253 = vrot.lane.b32.xlu0 %v1208_v9, %s3449_s20  ;;  %v1205_v14 = vsel %vm619_vm0, %v1203_v7, %v1204_v10  ;;  %v1609_v17 = vshrl.u32 %v3301_v6, 16  ;;  %v1611_v18 = vshll.u32 %v3301_v6, 16  ;;  %v1616_v19 = vshll.u32 %v3302_v11, 16  ;;  %v3516_v25 = vld [vmem:[%s3497_s19 + $0x30] sm:$0xff]   ;;  %v3307_v39 = vld [vmem:[%s3497_s19 + $0x24] sm:$0xff]  }
  0x17   : > { %1251 = vrot.lane.b32.xlu1 %v1205_v14, %s3449_s20  ;;  %v980_v20 = vshrl.u32 %v3299_v2, 16  ;;  %v1834_v21 = vsel %vm619_vm0, %v1832_v12, %v1833_v15  ;;  %v1836_v22 = vrot.slane %v3304_v16, 1  ;;  %v982_v23 = vshll.u32 %v3299_v2, 16  ;;  %v3521_v34 = vld [vmem:[%s3497_s19 + $0x38] ss:$0 sps:$4 sm:$0x11]  }
  0x18   : > { %v987_v24 = vshll.u32 %v3300_v5, 16  ;;  %v1613_v26 = vrot.slane %v1611_v18, 1  ;;  %v1618_v27 = vrot.slane %v1616_v19, 1  ;;  %v1621_v28 = vshrl.u32 %v3303_v8, 16  ;;  %v3529_v44 = vld [vmem:[%s3497_s19 + $0x30] sm:$0xff]   ;;  %v3552_v12 = vld [vmem:[%s3497_s19 + $0x48] sm:$0xff]  }
  0x19   : > { %v1623_v29 = vshll.u32 %v3303_v8, 16  ;;  %v1837_v30 = vsel %vm619_vm0, %v1835_v13, %v1836_v22  ;;  %v984_v31 = vrot.slane %v982_v23, 1  ;;  %v1628_v33 = vshll.u32 %v3304_v16, 16  ;;  %v3308_v52 = vld [vmem:[%s3497_s19 + $0x2c] ss:$0 sps:$4 sm:$0x11]  }
  0x1a   : > { %1880 = vrot.lane.b32.xlu0 %v1834_v21, %s3449_s20  ;;  %v989_v32 = vrot.slane %v987_v24, 1  ;;  %v1614_v35 = vor.u32 %v1613_v26, %v1609_v17  ;;  %v992_v37 = vshrl.u32 %v3500_v0, 16  ;;  %v994_v38 = vshll.u32 %v3500_v0, 16  ;;  %v3540_v60 = vld [vmem:[%s3497_s19 + $0x38] ss:$0 sps:$4 sm:$0x11]  }
  0x1b   : > { %1882 = vrot.lane.b32.xlu1 %v1837_v30, %s3449_s20  ;;  %v1625_v36 = vrot.slane %v1623_v29, 1  ;;  %v985_v40 = vor.u32 %v984_v31, %v980_v20  ;;  %v1630_v41 = vrot.slane %v1628_v33, 1  ;;  %v999_v42 = vshll.u32 %v3298_v1, 16  ;;  %v3311_v8 = vld [vmem:[%s3497_s19 + $0x3c] sm:$0xff]   ;;  %v3568_v29 = vld [vmem:[%s3497_s19 + $0x48] sm:$0xff]  }
  0x1c   : > { %v1016_v43 = vshrl.u32 %v3516_v25, 16  ;;  %v1619_v45 = vsel %vm394_vm1, %v1614_v35, %v1618_v27  ;;  %v996_v47 = vrot.slane %v994_v38, 1  ;;  %v1018_v48 = vshll.u32 %v3516_v25, 16  ;;  %v3312_v9 = vld [vmem:[%s3497_s19 + $0x44] ss:$0 sps:$4 sm:$0x11]  }
  0x1d   : > { %v1626_v46 = vor.u32 %v1625_v36, %v1621_v28  ;;  %v990_v49 = vsel %vm394_vm1, %v985_v40, %v989_v32  ;;  %v1001_v50 = vrot.slane %v999_v42, 1  ;;  %v1023_v51 = vshll.u32 %v3521_v34, 16  ;;  %v3557_v19 = vld [vmem:[%s3497_s19 + $0x50] ss:$0 sps:$4 sm:$0x11]   ;;  %v3315_v24 = vld [vmem:[%s3497_s19 + $0x3c] sm:$0xff]  }
  0x1e   : > { %v1004_v53 = vshrl.u32 %v3307_v39, 16  ;;  %1171 = vrot.lane.b32.xlu0 %v990_v49, %s3450_s21  ;;  %v997_v54 = vor.u32 %v996_v47, %v992_v37  ;;  %v1020_v55 = vrot.slane %v1018_v48, 1  ;;  %v1006_v56 = vshll.u32 %v3307_v39, 16  ;;  %v3316_v32 = vld [vmem:[%s3497_s19 + $0x44] ss:$0 sps:$4 sm:$0x11]  }
  0x1f   : > { %1800 = vrot.lane.b32.xlu1 %v1619_v45, %s3450_s21  ;;  %v1631_v57 = vsel %vm394_vm1, %v1626_v46, %v1630_v41  ;;  %v1025_v58 = vrot.slane %v1023_v51, 1  ;;  %v1011_v59 = vshll.u32 %v3308_v52, 16  ;;  %v1633_v61 = vshrl.u32 %v3529_v44, 16  ;;  %v3319_v47 = vld [vmem:[%s3497_s19 + $0x54] sm:$0xff]  }
  0x20   : > { %v1002_v62 = vsel %vm394_vm1, %v997_v54, %v1001_v50  ;;  %v1021_v63 = vor.u32 %v1020_v55, %v1016_v43  ;;  %v1008_v0 = vrot.slane %v1006_v56, 1  ;;  %v1635_v1 = vshll.u32 %v3529_v44, 16  ;;  %v3320_v55 = vld [vmem:[%s3497_s19 + $0x5c] ss:$0 sps:$4 sm:$0x11]  }
  0x21   : > { %v1013_v2 = vrot.slane %v1011_v59, 1  ;;  %v1640_v3 = vshll.u32 %v3540_v60, 16  ;;  %v1209_v4 = vrot.slane %v3307_v39, 1  ;;  %v1210_v7 = vrot.slane %v3308_v52, 1 }
  0x22   : > { %1173 = vrot.lane.b32.xlu0 %v1002_v62, %s3450_s21  ;;  %v1009_v5 = vor.u32 %v1008_v0, %v1004_v53  ;;  %v1637_v6 = vrot.slane %v1635_v1, 1  ;;  %v1026_v10 = vsel %vm394_vm1, %v1021_v63, %v1025_v58  ;;  %v1645_v15 = vshrl.u32 %v3311_v8, 16  ;;  %v3588_v58 = vld [vmem:[%s3497_s19 + $0x60] sm:$0xff]  }
  0x23   : > { %1802 = vrot.lane.b32.xlu1 %v1631_v57, %s3450_s21  ;;  %v1642_v11 = vrot.slane %v1640_v3, 1  ;;  %v1647_v16 = vshll.u32 %v3311_v8, 16  ;;  %v1652_v17 = vshll.u32 %v3312_v9, 16  ;;  %v1212_v18 = vrot.slane %v3516_v25, 1  ;;  %v3595_v3 = vld [vmem:[%s3497_s19 + $0x54] sm:$0xff]  }
  0x24   : > { %v1014_v13 = vsel %vm394_vm1, %v1009_v5, %v1013_v2  ;;  %v1638_v14 = vor.u32 %v1637_v6, %v1633_v61  ;;  %v1211_v20 = vsel %vm619_vm0, %v1209_v4, %v1210_v7  ;;  %v1213_v22 = vrot.slane %v3521_v34, 1  ;;  %v3598_v4 = vld [vmem:[%s3497_s19 + $0x68] ss:$0 sps:$4 sm:$0x11]  }
  0x25   : > { %v1649_v21 = vrot.slane %v1647_v16, 1  ;;  %v1838_v23 = vrot.slane %v3529_v44, 1  ;;  %v1654_v27 = vrot.slane %v1652_v17, 1  ;;  %v1841_v28 = vrot.slane %v3311_v8, 1 }
  0x26   : > { %1175 = vrot.lane.b32.xlu0 %v1014_v13, %s3450_s21  ;;  %v1643_v26 = vsel %vm394_vm1, %v1638_v14, %v1642_v11  ;;  %v1042_v25 = vshll.u32 %v3552_v12, 16  ;;  %v1047_v31 = vshll.u32 %v3557_v19, 16  ;;  %v1842_v33 = vrot.slane %v3312_v9, 1  ;;  %v3318_v44 = vld [vmem:[%s3497_s19 + $0x50] ss:$0 sps:$4 sm:$0x11]  }
  0x27   : > { %1177 = vrot.lane.b32.xlu1 %v1026_v10, %s3450_s21  ;;  %v1650_v30 = vor.u32 %v1649_v21, %v1645_v15  ;;  %v1040_v34 = vshrl.u32 %v3552_v12, 16  ;;  %v1030_v36 = vshll.u32 %v3315_v24, 16  ;;  %v1214_v37 = vsel %vm619_vm0, %v1212_v18, %v1213_v22  ;;  %v3324_v10 = vld [vmem:[%s3497_s19 + $0x5c] ss:$0 sps:$4 sm:$0x11]   ;;  %v3611_v15 = vld [vmem:[%s3497_s19 + $0x60] sm:$0xff]  }
  0x28   : > { %v1044_v35 = vrot.slane %v1042_v25, 1  ;;  %v1035_v38 = vshll.u32 %v3316_v32, 16  ;;  %v1659_v39 = vshll.u32 %v3568_v29, 16  ;;  %v1839_v41 = vrot.slane %v3540_v60, 1 }
  0x29   : > { %v1655_v40 = vsel %vm394_vm1, %v1650_v30, %v1654_v27  ;;  %v1028_v42 = vshrl.u32 %v3315_v24, 16  ;;  %v1032_v43 = vrot.slane %v1030_v36, 1  ;;  %v1049_v45 = vrot.slane %v1047_v31, 1  ;;  %v3616_v21 = vld [vmem:[%s3497_s19 + $0x68] ss:$0 sps:$4 sm:$0x11]  }
  0x2a   : > { %1255 = vrot.lane.b32.xlu0 %v1211_v20, %s3449_s20  ;;  %v1657_v46 = vshrl.u32 %v3568_v29, 16  ;;  %v1045_v48 = vor.u32 %v1044_v35, %v1040_v34  ;;  %v1037_v49 = vrot.slane %v1035_v38, 1  ;;  %v1661_v50 = vrot.slane %v1659_v39, 1  ;;  %v3328_v39 = vld [vmem:[%s3497_s19 + $0x74] ss:$0 sps:$4 sm:$0x11]  }
  0x2b   : > { %1804 = vrot.lane.b32.xlu1 %v1643_v26, %s3450_s21  ;;  %v1664_v51 = vshll.u32 %v3318_v44, 16  ;;  %v1843_v52 = vsel %vm619_vm0, %v1841_v28, %v1842_v33  ;;  %v1840_v53 = vsel %vm619_vm0, %v1838_v23, %v1839_v41  ;;  %v1033_v54 = vor.u32 %v1032_v43, %v1028_v42  ;;  %v3637_v42 = vld [vmem:[%s3497_s19 + $0x78] sm:$0xff]  }
  0x2c   : > { %v1671_v56 = vshll.u32 %v3319_v47, 16  ;;  %v1215_v57 = vrot.slane %v3315_v24, 1  ;;  %v1050_v59 = vsel %vm394_vm1, %v1045_v48, %v1049_v45  ;;  %v1662_v60 = vor.u32 %v1661_v50, %v1657_v46 }
  0x2d   : > { %v1666_v61 = vrot.slane %v1664_v51, 1  ;;  %v1216_v62 = vrot.slane %v3316_v32, 1  ;;  %v1038_v63 = vsel %vm394_vm1, %v1033_v54, %v1037_v49  ;;  %v1669_v0 = vshrl.u32 %v3319_v47, 16 }
  0x2e   : > { %1257 = vrot.lane.b32.xlu0 %v1214_v37, %s3449_s20  ;;  %v1673_v1 = vrot.slane %v1671_v56, 1  ;;  %v1676_v2 = vshll.u32 %v3320_v55, 16  ;;  %v1218_v5 = vrot.slane %v3552_v12, 1  ;;  %v1219_v7 = vrot.slane %v3557_v19, 1 }
  0x2f   : > { %1806 = vrot.lane.b32.xlu1 %v1655_v40, %s3450_s21  ;;  %v1217_v6 = vsel %vm619_vm0, %v1215_v57, %v1216_v62  ;;  %v1844_v8 = vrot.slane %v3568_v29, 1  ;;  %v1066_v9 = vshll.u32 %v3588_v58, 16  ;;  %v1667_v11 = vsel %vm394_vm1, %v1662_v60, %v1666_v61  ;;  %v3625_v29 = vld [vmem:[%s3497_s19 + $0x6c] sm:$0xff]   ;;  %v3661_v60 = vld [vmem:[%s3497_s19 + $0x78] sm:$0xff]  }
  0x30   : > { %v1674_v13 = vor.u32 %v1673_v1, %v1669_v0  ;;  %v1678_v14 = vrot.slane %v1676_v2, 1  ;;  %v1054_v12 = vshll.u32 %v3595_v3, 16  ;;  %v1847_v16 = vrot.slane %v3319_v47, 1  ;;  %v3644_v47 = vld [vmem:[%s3497_s19 + $0x6c] sm:$0xff]  }
  0x31   : > { %v1848_v17 = vrot.slane %v3320_v55, 1  ;;  %v1845_v18 = vrot.slane %v3318_v44, 1  ;;  %v1064_v20 = vshrl.u32 %v3588_v58, 16  ;;  %v1071_v19 = vshll.u32 %v3598_v4, 16 }
  0x32   : > { %1884 = vrot.lane.b32.xlu0 %v1840_v53, %s3449_s20  ;;  %v1220_v22 = vsel %vm619_vm0, %v1218_v5, %v1219_v7  ;;  %v1068_v23 = vrot.slane %v1066_v9, 1  ;;  %v1052_v24 = vshrl.u32 %v3595_v3, 16  ;;  %v1679_v26 = vsel %vm394_vm1, %v1674_v13, %v1678_v14  ;;  %v3651_v53 = vld [vmem:[%s3497_s19 + $0x74] ss:$0 sps:$4 sm:$0x11]   ;;  %v3335_v14 = vld [vmem:[%s3497_s19 + $0x84] sm:$0xff]  }
  0x33   : > { %1886 = vrot.lane.b32.xlu1 %v1843_v52, %s3449_s20  ;;  %v1056_v27 = vrot.slane %v1054_v12, 1  ;;  %v1059_v28 = vshll.u32 %v3324_v10, 16  ;;  %v1683_v25 = vshll.u32 %v3611_v15, 16  ;;  %v1849_v30 = vsel %vm619_vm0, %v1847_v16, %v1848_v17  ;;  %v3648_v52 = vld [vmem:[%s3497_s19 + $0x80] ss:$0 sps:$4 sm:$0x11]  }
  0x34   : > { %v1846_v31 = vsel %vm619_vm0, %v1844_v8, %v1845_v18  ;;  %v1069_v32 = vor.u32 %v1068_v23, %v1064_v20  ;;  %v1073_v33 = vrot.slane %v1071_v19, 1  ;;  %v1681_v34 = vshrl.u32 %v3611_v15, 16  ;;  %v3673_v8 = vld [vmem:[%s3497_s19 + $0x80] ss:$0 sps:$4 sm:$0x11]  }
  0x35   : > { %v1688_v35 = vshll.u32 %v3616_v21, 16  ;;  %v1057_v36 = vor.u32 %v1056_v27, %v1052_v24  ;;  %v1061_v37 = vrot.slane %v1059_v28, 1  ;;  %v1685_v38 = vrot.slane %v1683_v25, 1  ;;  %v3336_v23 = vld [vmem:[%s3497_s19 + $0x8c] ss:$0 sps:$4 sm:$0x11]  }
  0x36   : > { %1179 = vrot.lane.b32.xlu0 %v1038_v63, %s3450_s21  ;;  %v1695_v40 = vshll.u32 %v3625_v29, 16  ;;  %v1221_v41 = vrot.slane %v3595_v3, 1  ;;  %v1074_v43 = vsel %vm394_vm1, %v1069_v32, %v1073_v33  ;;  %v1222_v45 = vrot.slane %v3324_v10, 1  ;;  %v3689_v27 = vld [vmem:[%s3497_s19 + $0x90] sm:$0xff]  }
  0x37   : > { %1181 = vrot.lane.b32.xlu1 %v1050_v59, %s3450_s21  ;;  %v1690_v44 = vrot.slane %v1688_v35, 1  ;;  %v1693_v46 = vshrl.u32 %v3625_v29, 16  ;;  %v1062_v48 = vsel %vm394_vm1, %v1057_v36, %v1061_v37  ;;  %v1686_v49 = vor.u32 %v1685_v38, %v1681_v34  ;;  %v3702_v38 = vld [vmem:[%s3497_s19 + $0x98] ss:$0 sps:$4 sm:$0x11]  }
  0x38   : > { %v1697_v50 = vrot.slane %v1695_v40, 1  ;;  %v1700_v51 = vshll.u32 %v3328_v39, 16  ;;  %v1224_v54 = vrot.slane %v3588_v58, 1  ;;  %v1223_v55 = vsel %vm619_vm0, %v1221_v41, %v1222_v45  ;;  %v3340_v40 = vld [vmem:[%s3497_s19 + $0x8c] ss:$0 sps:$4 sm:$0x11]  }
  0x39   : > { %v1225_v56 = vrot.slane %v3598_v4, 1  ;;  %v1090_v57 = vshll.u32 %v3637_v42, 16  ;;  %v1078_v59 = vshll.u32 %v3644_v47, 16  ;;  %v1691_v61 = vsel %vm394_vm1, %v1686_v49, %v1690_v44 }
  0x3a   : > { %1259 = vrot.lane.b32.xlu0 %v1217_v6, %s3449_s20  ;;  %v1698_v62 = vor.u32 %v1697_v50, %v1693_v46  ;;  %v1702_v63 = vrot.slane %v1700_v51, 1  ;;  %v1853_v58 = vrot.slane %v3625_v29, 1  ;;  %v1854_v0 = vrot.slane %v3328_v39, 1 }
  0x3b   : > { %1808 = vrot.lane.b32.xlu1 %v1667_v11, %s3450_s21  ;;  %v1850_v1 = vrot.slane %v3611_v15, 1  ;;  %v1088_v2 = vshrl.u32 %v3637_v42, 16  ;;  %v1095_v3 = vshll.u32 %v3648_v52, 16  ;;  %v1076_v4 = vshrl.u32 %v3644_v47, 16 }
  0x3c   : > { %v1083_v5 = vshll.u32 %v3651_v53, 16  ;;  %v1092_v6 = vrot.slane %v1090_v57, 1  ;;  %v1080_v7 = vrot.slane %v1078_v59, 1  ;;  %v1707_v9 = vshll.u32 %v3661_v60, 16 }
  0x3d   : > { %v1703_v10 = vsel %vm394_vm1, %v1698_v62, %v1702_v63  ;;  %v1226_v11 = vsel %vm619_vm0, %v1224_v54, %v1225_v56  ;;  %v1851_v13 = vrot.slane %v3616_v21, 1  ;;  %v1097_v12 = vrot.slane %v1095_v3, 1  ;;  %v3728_v62 = vld [vmem:[%s3497_s19 + $0x9c] sm:$0xff]  }
  0x3e   : > { %1261 = vrot.lane.b32.xlu0 %v1220_v22, %s3449_s20  ;;  %v1085_v15 = vrot.slane %v1083_v5, 1  ;;  %v1705_v16 = vshrl.u32 %v3661_v60, 16  ;;  %v1093_v17 = vor.u32 %v1092_v6, %v1088_v2  ;;  %v1081_v18 = vor.u32 %v1080_v7, %v1076_v4  ;;  %v3344_v4 = vld [vmem:[%s3497_s19 + $0xa4] ss:$0 sps:$4 sm:$0x11]  }
  0x3f   : > { %1810 = vrot.lane.b32.xlu1 %v1679_v26, %s3450_s21  ;;  %v1709_v20 = vrot.slane %v1707_v9, 1  ;;  %v1712_v19 = vshll.u32 %v3673_v8, 16  ;;  %v1855_v22 = vsel %vm619_vm0, %v1853_v58, %v1854_v0  ;;  %v1852_v21 = vsel %vm619_vm0, %v1850_v1, %v1851_v13 }
  0x40   : > { %v1719_v24 = vshll.u32 %v3335_v14, 16  ;;  %v1227_v26 = vrot.slane %v3644_v47, 1  ;;  %v1098_v28 = vsel %vm394_vm1, %v1093_v17, %v1097_v12  ;;  %v1086_v25 = vsel %vm394_vm1, %v1081_v18, %v1085_v15  ;;  %v3747_v15 = vld [vmem:[%s3497_s19 + $0x9c] sm:$0xff]  }
  0x41   : > { %v1710_v29 = vor.u32 %v1709_v20, %v1705_v16  ;;  %v1714_v32 = vrot.slane %v1712_v19, 1  ;;  %v1717_v33 = vshrl.u32 %v3335_v14, 16  ;;  %v1724_v35 = vshll.u32 %v3336_v23, 16 }
  0x42   : > { %1888 = vrot.lane.b32.xlu0 %v1846_v31, %s3449_s20  ;;  %v3697_v31 = vld [vmem:[%s3497_s19 + $0x84] sm:$0xff]   ;;  %v1721_v34 = vrot.slane %v1719_v24, 1  ;;  %v1230_v36 = vrot.slane %v3637_v42, 1  ;;  %v1231_v37 = vrot.slane %v3648_v52, 1  ;;  %v1114_v39 = vshll.u32 %v3689_v27, 16  ;;  %v3712_v42 = vld [vmem:[%s3497_s19 + $0x90] sm:$0xff]  }
  0x43   : > { %1890 = vrot.lane.b32.xlu1 %v1849_v30, %s3449_s20  ;;  %v1228_v30 = vrot.slane %v3651_v53, 1  ;;  %v1102_v41 = vshll.u32 %v3697_v31, 16  ;;  %v1726_v46 = vrot.slane %v1724_v35, 1  ;;  %v1859_v47 = vrot.slane %v3335_v14, 1  ;;  %v3757_v24 = vld [vmem:[%s3497_s19 + $0xa8] sm:$0xff]  }
  0x44   : > { %v1722_v45 = vor.u32 %v1721_v34, %v1717_v33  ;;  %v1856_v49 = vrot.slane %v3661_v60, 1  ;;  %v1857_v50 = vrot.slane %v3673_v8, 1  ;;  %v1112_v51 = vshrl.u32 %v3689_v27, 16  ;;  %v3724_v60 = vld [vmem:[%s3497_s19 + $0x98] ss:$0 sps:$4 sm:$0x11]  }
  0x45   : > { %v1229_v44 = vsel %vm619_vm0, %v1227_v26, %v1228_v30  ;;  %v1119_v52 = vshll.u32 %v3702_v38, 16  ;;  %v1100_v53 = vshrl.u32 %v3697_v31, 16  ;;  %v1116_v54 = vrot.slane %v1114_v39, 1  ;;  %v3348_v30 = vld [vmem:[%s3497_s19 + $0xa4] ss:$0 sps:$4 sm:$0x11]  }
  0x46   : > { %1183 = vrot.lane.b32.xlu0 %v1062_v48, %s3450_s21  ;;  %v1860_v48 = vrot.slane %v3336_v23, 1  ;;  %v1727_v56 = vsel %vm394_vm1, %v1722_v45, %v1726_v46  ;;  %v1232_v57 = vsel %vm619_vm0, %v1230_v36, %v1231_v37  ;;  %v1107_v59 = vshll.u32 %v3340_v40, 16  ;;  %v3754_v23 = vld [vmem:[%s3497_s19 + $0xb0] ss:$0 sps:$4 sm:$0x11]   ;;  %v3780_v46 = vld [vmem:[%s3497_s19 + $0xb4] sm:$0xff]  }
  0x47   : > { %1185 = vrot.lane.b32.xlu1 %v1074_v43, %s3450_s21  ;;  %v1715_v43 = vsel %vm394_vm1, %v1710_v29, %v1714_v32  ;;  %v1121_v58 = vrot.slane %v1119_v52, 1  ;;  %v1858_v0 = vsel %vm619_vm0, %v1856_v49, %v1857_v50  ;;  %v1117_v1 = vor.u32 %v1116_v54, %v1112_v51  ;;  %v3352_v52 = vld [vmem:[%s3497_s19 + $0xbc] ss:$0 sps:$4 sm:$0x11]  }
  0x48   : > { %v1861_v63 = vsel %vm619_vm0, %v1859_v47, %v1860_v48  ;;  %v1729_v3 = vshrl.u32 %v3712_v42, 16  ;;  %v1109_v5 = vrot.slane %v1107_v59, 1  ;;  %v1736_v7 = vshll.u32 %v3724_v60, 16 }
  0x49   : > { %v1743_v8 = vshll.u32 %v3728_v62, 16  ;;  %v1233_v9 = vrot.slane %v3697_v31, 1  ;;  %v1234_v13 = vrot.slane %v3340_v40, 1  ;;  %v1741_v14 = vshrl.u32 %v3728_v62, 16 }
  0x4a   : > { %1263 = vrot.lane.b32.xlu0 %v1223_v55, %s3449_s20  ;;  %v1104_v55 = vrot.slane %v1102_v41, 1  ;;  %v1748_v12 = vshll.u32 %v3344_v4, 16  ;;  %v1738_v18 = vrot.slane %v1736_v7, 1  ;;  %v1236_v19 = vrot.slane %v3689_v27, 1 }
  0x4b   : > { %1812 = vrot.lane.b32.xlu1 %v1691_v61, %s3450_s21  ;;  %v1731_v61 = vshll.u32 %v3712_v42, 16  ;;  %v1745_v20 = vrot.slane %v1743_v8, 1  ;;  %v1235_v27 = vsel %vm619_vm0, %v1233_v9, %v1234_v13  ;;  %v1126_v31 = vshll.u32 %v3747_v15, 16  ;;  %v3775_v40 = vld [vmem:[%s3497_s19 + $0xb0] ss:$0 sps:$4 sm:$0x11]  }
  0x4c   : > { %v1105_v2 = vor.u32 %v1104_v55, %v1100_v53  ;;  %v1750_v26 = vrot.slane %v1748_v12, 1  ;;  %v1866_v32 = vrot.slane %v3344_v4, 1  ;;  %v1862_v33 = vrot.slane %v3712_v42, 1  ;;  %v3803_v4 = vld [vmem:[%s3497_s19 + $0xbc] ss:$0 sps:$4 sm:$0x11]  }
  0x4d   : > { %v1733_v6 = vrot.slane %v1731_v61, 1  ;;  %v1746_v29 = vor.u32 %v1745_v20, %v1741_v14  ;;  %v1863_v34 = vrot.slane %v3724_v60, 1  ;;  %v1143_v36 = vshll.u32 %v3754_v23, 16  ;;  %v3795_v60 = vld [vmem:[%s3497_s19] sm:$0xff]  }
  0x4e   : > { %1265 = vrot.lane.b32.xlu0 %v1226_v11, %s3449_s20  ;;  %v1122_v11 = vsel %vm394_vm1, %v1117_v1, %v1121_v58  ;;  %v1110_v16 = vsel %vm394_vm1, %v1105_v2, %v1109_v5  ;;  %v1124_v37 = vshrl.u32 %v3747_v15, 16  ;;  %v1755_v45 = vshll.u32 %v3757_v24, 16  ;;  %v3806_v5 = vld [vmem:[%s3497_s19 + $0x8] ss:$0 sps:$4 sm:$0x11]   ;;  %v3815_v13 = vld [vmem:[%s3497_s19 + $0xc0] sm:$0xff]  }
  0x4f   : > { %1814 = vrot.lane.b32.xlu1 %v1703_v10, %s3450_s21  ;;  %v3740_v10 = vld [vmem:[%s3497_s19 + $0xa8] sm:$0xff]   ;;  %v1734_v17 = vor.u32 %v1733_v6, %v1729_v3  ;;  %v1751_v41 = vsel %vm394_vm1, %v1746_v29, %v1750_v26  ;;  %v1145_v42 = vrot.slane %v1143_v36, 1  ;;  %v1753_v47 = vshrl.u32 %v3757_v24, 16 }
  0x50   : > { %v1136_v35 = vshrl.u32 %v3740_v10, 16  ;;  %v1864_v49 = vsel %vm619_vm0, %v1862_v33, %v1863_v34  ;;  %v1760_v51 = vshll.u32 %v3775_v40, 16  ;;  %v1757_v55 = vrot.slane %v1755_v45, 1  ;;  %v3830_v26 = vld [vmem:[%s3497_s19 + $0xc8] ss:$0 sps:$4 sm:$0x11]  }
  0x51   : > { %v1239_v59 = vrot.slane %v3747_v15, 1  ;;  %v1772_v58 = vshll.u32 %v3352_v52, 16  ;;  %v398_v7 = vshll.u32 %v3795_v60, 16  ;;  %v1242_v9 = vrot.slane %v3740_v10, 1 }
  0x52   : > { %1892 = vrot.lane.b32.xlu0 %v1852_v21, %s3449_s20  ;;  %v1865_v21 = vrot.slane %v3728_v62, 1  ;;  %v1762_v61 = vrot.slane %v1760_v51, 1  ;;  %v1240_v62 = vrot.slane %v3348_v30, 1  ;;  %v1758_v2 = vor.u32 %v1757_v55, %v1753_v47 }
  0x53   : > { %1894 = vrot.lane.b32.xlu1 %v1855_v22, %s3449_s20  ;;  %v1237_v22 = vrot.slane %v3702_v38, 1  ;;  %v1774_v8 = vrot.slane %v1772_v58, 1  ;;  %v403_v20 = vshll.u32 %v3806_v5, 16  ;;  %v1868_v29 = vrot.slane %v3757_v24, 1 }
  0x54   : > { %v1867_v48 = vsel %vm619_vm0, %v1865_v21, %v1866_v32  ;;  %v1763_v14 = vsel %vm394_vm1, %v1758_v2, %v1762_v61  ;;  %v1241_v12 = vsel %vm619_vm0, %v1239_v59, %v1240_v62  ;;  %v396_v21 = vshrl.u32 %v3795_v60, 16  ;;  %v3845_v24 = vld [vmem:[%s3497_s19 + $0xc8] ss:$0 sps:$4 sm:$0x11]  }
  0x55   : > { %v1238_v38 = vsel %vm619_vm0, %v1236_v19, %v1237_v22  ;;  %v3823_v19 = vld [vmem:[%s3497_s19 + $0xc0] sm:$0xff]   ;;  %v405_v33 = vrot.slane %v403_v20, 1  ;;  %v1160_v34 = vshrl.u32 %v3815_v13, 16 }
  0x56   : > { %1187 = vrot.lane.b32.xlu0 %v1086_v25, %s3450_s21  ;;  %v1739_v25 = vsel %vm394_vm1, %v1734_v17, %v1738_v18  ;;  %v1872_v17 = vrot.slane %v3352_v52, 1  ;;  %v1155_v18 = vshll.u32 %v3803_v4, 16  ;;  %v1777_v47 = vshrl.u32 %v3823_v19, 16 }
  0x57   : > { %1189 = vrot.lane.b32.xlu1 %v1098_v28, %s3450_s21  ;;  %v1138_v28 = vshll.u32 %v3740_v10, 16 }
  0x58   : > { %v1157_v32 = vrot.slane %v1155_v18, 1 }
  0x59   : > { %v1140_v39 = vrot.slane %v1138_v28, 1  ;;  %v1162_v28 = vshll.u32 %v3815_v13, 16 }
  0x5a   : > { %1267 = vrot.lane.b32.xlu0 %v1229_v44, %s3449_s20  ;;  %v1131_v44 = vshll.u32 %v3348_v30, 16  ;;  %v1869_v30 = vrot.slane %v3775_v40, 1 }
  0x5b   : > { %1816 = vrot.lane.b32.xlu1 %v1715_v43, %s3450_s21  ;;  %v1128_v43 = vrot.slane %v1126_v31, 1  ;;  %v1141_v50 = vor.u32 %v1140_v39, %v1136_v35  ;;  %v3838_v31 = vld [vmem:[%s3497_s19 + $0xc] sm:$0xff]   ;;  %v1779_v39 = vshll.u32 %v3823_v19, 16 }
  0x5c   : > { %v1133_v54 = vrot.slane %v1131_v44, 1  ;;  %v410_v44 = vshll.u32 %v3838_v31, 16 }
  0x5d   : > { %v1129_v53 = vor.u32 %v1128_v43, %v1124_v37  ;;  %v1164_v37 = vrot.slane %v1162_v28, 1  ;;  %v3851_v43 = vld [vmem:[%s3497_s19 + $0x14] ss:$0 sps:$4 sm:$0x11]   ;;  %v1781_v52 = vrot.slane %v1779_v39, 1  ;;  %v3393_v28 = vld [vmem:[%s4542_s1] sm:$0xff]  }
  0x5e   : > { %1269 = vrot.lane.b32.xlu0 %v1232_v57, %s3449_s20  ;;  %v3791_v57 = vld [vmem:[%s3497_s19 + $0xb4] sm:$0xff]   ;;  %v412_v55 = vrot.slane %v410_v44, 1  ;;  %3222 = vmatprep.subr.bf16.mxu0 %v3393_v28 }
  0x5f   : > { %1818 = vrot.lane.b32.xlu1 %v1727_v56, %s3450_s21  ;;  %v1767_v56 = vshll.u32 %v3780_v46, 16  ;;  %v1134_v1 = vsel %vm394_vm1, %v1129_v53, %v1133_v54  ;;  %v1150_v6 = vshll.u32 %v3791_v57, 16  ;;  %v1148_v10 = vshrl.u32 %v3791_v57, 16  ;;  %3260 = vmatprep.subr.bf16.mxu1 %v3393_v28 }
  0x60   : > { %v1784_v53 = vshll.u32 %v3845_v24, 16  ;;  %v408_v54 = vshrl.u32 %v3838_v31, 16  ;;  %v1782_v62 = vor.u32 %v1781_v52, %v1777_v47  ;;  %3223 = vmatpush3.bf16.msra.mxu0 %v3393_v28  ;;  %3263 = vmatpush3.bf16.msra.mxu1 %v3393_v28 }
  0x61   : > { %v1769_v3 = vrot.slane %v1767_v56, 1  ;;  %v1152_v22 = vrot.slane %v1150_v6, 1  ;;  %v415_v56 = vshll.u32 %v3851_v43, 16 }
  0x62   : > { %1896 = vrot.lane.b32.xlu0 %v1858_v0, %s3449_s20  ;;  %v1146_v0 = vsel %vm394_vm1, %v1141_v50, %v1145_v42  ;;  %v1246_v42 = vrot.slane %v3803_v4, 1  ;;  %v1165_v50 = vor.u32 %v1164_v37, %v1160_v34  ;;  %v1786_v58 = vrot.slane %v1784_v53, 1 }
  0x63   : > { %1898 = vrot.lane.b32.xlu1 %v1861_v63, %s3449_s20  ;;  %v1765_v63 = vshrl.u32 %v3780_v46, 16  ;;  %v1153_v35 = vor.u32 %v1152_v22, %v1148_v10  ;;  %v620_v4 = vrot.slane %v3795_v60, 1  ;;  %v1874_v22 = vrot.slane %v3823_v19, 1 }
  0x65   : > { %v1770_v15 = vor.u32 %v1769_v3, %v1765_v63  ;;  %v1158_v45 = vsel %vm394_vm1, %v1153_v35, %v1157_v32  ;;  %v3364_v63 = vld [vmem:[%s3497_s19 + $0xd4] ss:$0 sps:$4 sm:$0x11]  }
  0x66   : > { %1191 = vrot.lane.b32.xlu0 %v1110_v16, %s3450_s21  ;;  %v1871_v16 = vrot.slane %v3780_v46, 1  ;;  %v1245_v46 = vrot.slane %v3791_v57, 1  ;;  %v1878_v35 = vrot.slane %v3364_v63, 1 }
  0x67   : > { %1193 = vrot.lane.b32.xlu1 %v1122_v11, %s3450_s21  ;;  %v1243_v11 = vrot.slane %v3754_v23, 1  ;;  %v400_v23 = vrot.slane %v398_v7, 1  ;;  %v621_v7 = vrot.slane %v3806_v5, 1 }
  0x68   : > { %v1873_v40 = vsel %vm619_vm0, %v1871_v16, %v1872_v17  ;;  %v1247_v61 = vsel %vm619_vm0, %v1245_v46, %v1246_v42  ;;  %v1796_v16 = vshll.u32 %v3364_v63, 16  ;;  %v3395_v42 = vld [vmem:[%s4542_s1 + $0x10] ss:$0 sps:$4 sm:$0x33]  }
  0x69   : > { %v401_v36 = vor.u32 %v400_v23, %v396_v21  ;;  %v622_v5 = vsel %vm619_vm0, %v620_v4, %v621_v7  ;;  %v1875_v21 = vrot.slane %v3845_v24, 1  ;;  %v3918_v24 = vld [vmem:[%s3497_s19 + $0x20] ss:$0 sps:$4 sm:$0x11]   ;;  %v2144_v63 = vsel %vm2142_vm4, %v3395_v42, 0  ;;  %v3399_v4 = vld [vmem:[%s3497_s19 + $0x24] sm:$0xff]  }
  0x6a   : > { %1271 = vrot.lane.b32.xlu0 %v1235_v27, %s3449_s20  ;;  %v1244_v27 = vsel %vm619_vm0, %v1242_v9, %v1243_v11  ;;  %v1249_v9 = vrot.slane %v3830_v26, 1  ;;  %v1798_v10 = vrot.slane %v1796_v16, 1  ;;  %v427_v53 = vshll.u32 %v3918_v24, 16 }
  0x6b   : > { %1820 = vrot.lane.b32.xlu1 %v1739_v25, %s3450_s21  ;;  %v1775_v25 = vsel %vm394_vm1, %v1770_v15, %v1774_v8  ;;  %v1248_v8 = vrot.slane %v3815_v13, 1 }
  0x6d   : > { %v1250_v18 = vsel %vm619_vm0, %v1248_v8, %v1249_v9  ;;  %v429_v9 = vrot.slane %v427_v53, 1 }
  0x6e   : > { %1273 = vrot.lane.b32.xlu0 %v1238_v38, %s3449_s20  ;;  %v1167_v38 = vshll.u32 %v3830_v26, 16 }
  0x6f   : > { %1822 = vrot.lane.b32.xlu1 %v1751_v41, %s3450_s21  ;;  %v1870_v41 = vsel %vm619_vm0, %v1868_v29, %v1869_v30  ;;  %v3904_v29 = vld [vmem:[%s3497_s19 + $0x18] sm:$0xff]   ;;  %v3907_v30 = vld [vmem:[%s3497_s19 + $0x24] sm:$0xff]  }
  0x70   : > { %v1169_v51 = vrot.slane %v1167_v38, 1  ;;  %v3394_v38 = vld [vmem:[%s4542_s1 + $0x8] sm:$0xff]   ;;  %v434_v44 = vshll.u32 %v3907_v30, 16  ;;  %v420_v47 = vshrl.u32 %v3904_v29, 16  ;;  %v626_v16 = vrot.slane %v3904_v29, 1 }
  0x71   : > { %3224 = vmatprep.subr.bf16.mxu0 %v3394_v38  ;;  %3261 = vmatprep.subr.bf16.mxu1 %v3394_v38 }
  0x72   : > { %1900 = vrot.lane.b32.xlu0 %v1864_v49, %s3449_s20  ;;  %v406_v49 = vsel %vm394_vm1, %v401_v36, %v405_v33  ;;  %v1170_v59 = vsel %vm394_vm1, %v1165_v50, %v1169_v51  ;;  %v1876_v33 = vsel %vm619_vm0, %v1874_v22, %v1875_v21  ;;  %3225 = vmatpush3.bf16.msra.mxu0 %v3394_v38  ;;  %v3397_v51 = vld [vmem:[%s3497_s19 + $0x18] sm:$0xff]  }
  0x73   : > { %1902 = vrot.lane.b32.xlu1 %v1867_v48, %s3449_s20  ;;  %v3859_v48 = vld [vmem:[%s3497_s19 + $0xcc] sm:$0xff]   ;;  %3264 = vmatpush3.bf16.msra.mxu1 %v3394_v38  ;;  %v3972_v22 = vld [vmem:[%s3497_s19 + $0x3c] sm:$0xff]  }
  0x74   : > { %v1791_v2 = vshll.u32 %v3859_v48, 16  ;;  %v1789_v11 = vshrl.u32 %v3859_v48, 16  ;;  %v1877_v34 = vrot.slane %v3859_v48, 1  ;;  %3266 = vmatprep.subr.msk.bf16.mxu0 %vm2142_vm4, %v3395_v42  ;;  %3267 = vmatprep.subr.msk.bf16.mxu1 %vm2142_vm4, %v3395_v42 }
  0x76   : > { %1195 = vrot.lane.b32.xlu0 %v1134_v1, %s3450_s21  ;;  %v417_v1 = vrot.slane %v415_v56, 1  ;;  %v1793_v15 = vrot.slane %v1791_v2, 1  ;;  %v436_v56 = vrot.slane %v434_v44, 1  ;;  %3227 = vmatpush3.bf16.msra.mxu0 %v2144_v63  ;;  %v3401_v44 = vld [vmem:[%s3497_s19 + $0x24] sm:$0xff]  }
  0x77   : > { %1197 = vrot.lane.b32.xlu1 %v1146_v0, %s3450_s21  ;;  %v413_v0 = vor.u32 %v412_v55, %v408_v54  ;;  %v432_v54 = vshrl.u32 %v3907_v30, 16  ;;  %3265 = vmatpush3.bf16.msra.mxu1 %v2144_v63 }
  0x78   : > { %v1794_v20 = vor.u32 %v1793_v15, %v1789_v11 }
  0x7a   : > { %1275 = vrot.lane.b32.xlu0 %v1241_v12, %s3449_s20  ;;  %v418_v12 = vsel %vm394_vm1, %v413_v0, %v417_v1  ;;  %v1799_v32 = vsel %vm394_vm1, %v1794_v20, %v1798_v10  ;;  %v3398_v1 = vld [vmem:[%s3497_s19 + $0x18] sm:$0xff]   ;;  %v629_v10 = vrot.slane %v3907_v30, 1 }
  0x7b   : > { %1824 = vrot.lane.b32.xlu1 %v1763_v14, %s3450_s21  ;;  %v1787_v14 = vsel %vm394_vm1, %v1782_v62, %v1786_v58 }
  0x7e   : > { %1277 = vrot.lane.b32.xlu0 %v1244_v27, %s3449_s20  ;;  %v624_v27 = vrot.slane %v3851_v43, 1  ;;  %v3924_v43 = vld [vmem:[%s3497_s19 + $0x2c] ss:$0 sps:$4 sm:$0x11]  }
  0x7f   : > { %1826 = vrot.lane.b32.xlu1 %v1775_v25, %s3450_s21  ;;  %v623_v25 = vrot.slane %v3838_v31, 1 }
  0x81   : > { %v625_v39 = vsel %vm619_vm0, %v623_v25, %v624_v27 }
  0x82   : > { %1904 = vrot.lane.b32.xlu0 %v1870_v41, %s3449_s20  ;;  %v422_v41 = vshll.u32 %v3904_v29, 16 }
  0x83   : > { %1906 = vrot.lane.b32.xlu1 %v1873_v40, %s3449_s20  ;;  %v1879_v40 = vsel %vm619_vm0, %v1877_v34, %v1878_v35 }
  0x84   : > { %v424_v55 = vrot.slane %v422_v41, 1  ;;  %v3400_v41 = vld [vmem:[%s3497_s19 + $0x30] sm:$0xff]  }
  0x86   : > { %1199 = vrot.lane.b32.xlu0 %v1158_v45, %s3450_s21  ;;  %v425_v8 = vor.u32 %v424_v55, %v420_v47 }
  0x87   : > { %587 = vrot.lane.b32.xlu1 %v406_v49, %s3450_s21  ;;  %v3396_v49 = vld [vmem:[%s3497_s19 + $0xc] sm:$0xff]  }
  0x88   : > { %v3869_v57 = vpop.permute.xlu0 %1253  ;;  %v430_v20 = vsel %vm394_vm1, %v425_v8, %v429_v9  ;;  %v4016_v9 = vld [vmem:[%s3497_s19 + $0x48] sm:$0xff]  }
  0x89   : > { %v3875_v3 = vpop.permute.xlu1 %1251 }
  0x8a   : > { %1201 = vrot.lane.b32.xlu0 %v1170_v59, %s3450_s21  ;;  %v439_v59 = vshll.u32 %v3924_v43, 16 }
  0x8b   : > { %1279 = vrot.lane.b32.xlu1 %v1247_v61, %s3449_s20 }
  0x8c   : > { %v3880_v6 = vpop.permute.xlu0 %1880  ;;  %v441_v11 = vrot.slane %v439_v59, 1 }
  0x8d   : > { %v3888_v17 = vpop.permute.xlu1 %1882 }
  0x8e   : > { %1828 = vrot.lane.b32.xlu0 %v1787_v14, %s3450_s21 }
  0x8f   : > { %589 = vrot.lane.b32.xlu1 %v418_v12, %s3450_s21 }
  0x90   : > { %v1172_v26 = vpop.permute.xlu0 %1171 }
  0x91   : > { %v1801_v23 = vpop.permute.xlu1 %1800  ;;  %v1284_v50 = vsel %vm700_vm2, %v3396_v49, %v1172_v26  ;;  %v3370_v26 = vld [vmem:[%s3497_s19 + $0x38] ss:$0 sps:$4 sm:$0x11]  }
  0x92   : > { %668 = vrot.lane.b32.xlu0 %v622_v5, %s3449_s20  ;;  %v1316_v58 = vsel %vm733_vm3, %v1284_v50, %v3875_v3  ;;  %v1913_v2 = vsel %vm700_vm2, %v3398_v1, %v1801_v23  ;;  %v437_v3 = vor.u32 %v436_v56, %v432_v54  ;;  %v627_v5 = vrot.slane %v3918_v24, 1  ;;  %v3403_v56 = vld [vmem:[%s3497_s19 + $0x3c] sm:$0xff]  }
  0x93   : > { %1281 = vrot.lane.b32.xlu1 %v1250_v18, %s3449_s20  ;;  %v1945_v12 = vsel %vm733_vm3, %v1913_v2, %v3880_v6  ;;  %v3965_v18 = vld [vmem:[%s3497_s19 + $0x30] sm:$0xff]   ;;  %v451_v38 = vshll.u32 %v3370_v26, 16  ;;  %v456_v24 = vshrl.u32 %v3972_v22, 16  ;;  %v633_v2 = vrot.slane %v3370_v26, 1 }
  0x94   : > { %v1174_v37 = vpop.permute.xlu0 %1173  ;;  %v442_v6 = vsel %vm394_vm1, %v437_v3, %v441_v11  ;;  %v446_v28 = vshll.u32 %v3965_v18, 16  ;;  %v628_v25 = vsel %vm619_vm0, %v626_v16, %v627_v5  ;;  %v632_v1 = vrot.slane %v3965_v18, 1  ;;  %v4019_v3 = vld [vmem:[%s3497_s19 + $0x54] sm:$0xff]   ;;  %v3376_v5 = vld [vmem:[%s3497_s19 + $0x5c] ss:$0 sps:$4 sm:$0x11]  }
  0x95   : > { %v1803_v36 = vpop.permute.xlu1 %1802  ;;  %v1286_v52 = vsel %vm700_vm2, %v3397_v51, %v1174_v37  ;;  %v453_v53 = vrot.slane %v451_v38, 1  ;;  %v470_v16 = vshll.u32 %v4016_v9, 16 }
  0x96   : > { %1830 = vrot.lane.b32.xlu0 %v1799_v32, %s3450_s21  ;;  %v1318_v0 = vsel %vm733_vm3, %v1286_v52, %v3869_v57  ;;  %v1915_v7 = vsel %vm700_vm2, %v3399_v4, %v1803_v36  ;;  %v3372_v32 = vld [vmem:[%s3497_s19 + $0x44] ss:$0 sps:$4 sm:$0x11]   ;;  %v444_v36 = vshrl.u32 %v3965_v18, 16  ;;  %v448_v37 = vrot.slane %v446_v28, 1 }
  0x97   : > { %1908 = vrot.lane.b32.xlu1 %v1876_v33, %s3449_s20  ;;  %v1947_v15 = vsel %vm733_vm3, %v1915_v7, %v3888_v17  ;;  %v630_v17 = vrot.slane %v3924_v43, 1  ;;  %v458_v33 = vshll.u32 %v3972_v22, 16  ;;  %v635_v7 = vrot.slane %v3972_v22, 1 }
  0x98   : > { %v3929_v46 = vpop.permute.xlu0 %1175  ;;  %v449_v52 = vor.u32 %v448_v37, %v444_v36  ;;  %v636_v8 = vrot.slane %v3372_v32, 1 }
  0x99   : > { %v3927_v45 = vpop.permute.xlu1 %1177  ;;  %v631_v27 = vsel %vm619_vm0, %v629_v10, %v630_v17  ;;  %v1288_v42 = vsel %vm700_vm2, %v3401_v44, %v3929_v46  ;;  %v468_v17 = vshrl.u32 %v4016_v9, 16 }
  0x9a   : > { %670 = vrot.lane.b32.xlu0 %v625_v39, %s3449_s20  ;;  %v460_v39 = vrot.slane %v458_v33, 1  ;;  %v1290_v43 = vsel %vm700_vm2, %v3400_v41, %v3927_v45  ;;  %v3402_v45 = vld [vmem:[%s3497_s19 + $0x30] sm:$0xff]   ;;  %v3405_v33 = vld [vmem:[%s3497_s19 + $0x3c] sm:$0xff]  }
  0x9b   : > { %1910 = vrot.lane.b32.xlu1 %v1879_v40, %s3449_s20  ;;  %v463_v40 = vshll.u32 %v3372_v32, 16 }
  0x9c   : > { %v1256_v62 = vpop.permute.xlu0 %1255  ;;  %v461_v54 = vor.u32 %v460_v39, %v456_v24 }
  0x9d   : > { %v3944_v61 = vpop.permute.xlu1 %1804  ;;  %v1320_v50 = vsel %vm733_vm3, %v1288_v42, %v1256_v62  ;;  %v465_v55 = vrot.slane %v463_v40, 1  ;;  %v3407_v42 = vld [vmem:[%s3497_s19 + $0x54] sm:$0xff]  }
  0x9e   : > { %1363 = vrot.lane.b32.xlu0 %v1316_v58, %s3451_s28  ;;  %v1917_v46 = vsel %vm700_vm2, %v3402_v45, %v3944_v61  ;;  %v454_v61 = vsel %vm394_vm1, %v449_v52, %v453_v53 }
  0x9f   : > { %1365 = vrot.lane.b32.xlu1 %v1318_v0, %s3451_s28  ;;  %v466_v4 = vsel %vm394_vm1, %v461_v54, %v465_v55  ;;  %v638_v54 = vrot.slane %v4016_v9, 1 }
  0xa0   : > { %v1258_v14 = vpop.permute.xlu0 %1257 }
  0xa1   : > { %v1807_v57 = vpop.permute.xlu1 %1806  ;;  %v1322_v51 = vsel %vm733_vm3, %v1290_v43, %v1258_v14  ;;  %v3374_v14 = vld [vmem:[%s3497_s19 + $0x50] ss:$0 sps:$4 sm:$0x11]  }
  0xa2   : > { %1992 = vrot.lane.b32.xlu0 %v1945_v12, %s3452_s29  ;;  %v1919_v59 = vsel %vm700_vm2, %v3403_v56, %v1807_v57  ;;  %v634_v12 = vsel %vm619_vm0, %v632_v1, %v633_v2  ;;  %v475_v26 = vshll.u32 %v3374_v14, 16  ;;  %v639_v55 = vrot.slane %v3374_v14, 1 }
  0xa3   : > { %1994 = vrot.lane.b32.xlu1 %v1947_v15, %s3452_s29  ;;  %v637_v15 = vsel %vm619_vm0, %v635_v7, %v636_v8  ;;  %v642_v56 = vrot.slane %v3376_v5, 1 }
  0xa4   : > { %v1885_v23 = vpop.permute.xlu0 %1884  ;;  %v477_v41 = vrot.slane %v475_v26, 1  ;;  %v640_v1 = vsel %vm619_vm0, %v638_v54, %v639_v55  ;;  %v3382_v55 = vld [vmem:[%s3497_s19 + $0x80] ss:$0 sps:$4 sm:$0x11]  }
  0xa5   : > { %v1887_v21 = vpop.permute.xlu1 %1886  ;;  %v1949_v58 = vsel %vm733_vm3, %v1917_v46, %v1885_v23  ;;  %v472_v23 = vrot.slane %v470_v16, 1  ;;  %v641_v46 = vrot.slane %v4019_v3, 1 }
  0xa6   : > { %591 = vrot.lane.b32.xlu0 %v430_v20, %s3450_s21  ;;  %v1951_v0 = vsel %vm733_vm3, %v1919_v59, %v1887_v21  ;;  %v482_v20 = vshll.u32 %v4019_v3, 16  ;;  %v480_v21 = vshrl.u32 %v4019_v3, 16  ;;  %v4063_v59 = vld [vmem:[%s3497_s19 + $0x60] sm:$0xff]  }
  0xa7   : > { %593 = vrot.lane.b32.xlu1 %v442_v6, %s3450_s21  ;;  %v473_v40 = vor.u32 %v472_v23, %v468_v17  ;;  %v643_v2 = vsel %vm619_vm0, %v641_v46, %v642_v56  ;;  %v3384_v56 = vld [vmem:[%s3497_s19 + $0x8c] ss:$0 sps:$4 sm:$0x11]  }
  0xa8   : > { %v3984_v35 = vpop.permute.xlu0 %1179  ;;  %v484_v28 = vrot.slane %v482_v20, 1  ;;  %v3408_v20 = vld [vmem:[%s3497_s19 + $0x60] sm:$0xff]  }
  0xa9   : > { %v3982_v34 = vpop.permute.xlu1 %1181  ;;  %v1292_v36 = vsel %vm700_vm2, %v3405_v33, %v3984_v35 }
  0xaa   : > { %672 = vrot.lane.b32.xlu0 %v628_v25, %s3449_s20  ;;  %v487_v25 = vshll.u32 %v3376_v5, 16  ;;  %v485_v43 = vor.u32 %v484_v28, %v480_v21  ;;  %v3409_v21 = vld [vmem:[%s3497_s19 + $0x54] sm:$0xff]  }
  0xab   : > { %674 = vrot.lane.b32.xlu1 %v631_v27, %s3449_s20  ;;  %v3404_v27 = vld [vmem:[%s3497_s19 + $0x48] sm:$0xff]  }
  0xac   : > { %v1260_v49 = vpop.permute.xlu0 %1259  ;;  %v1294_v32 = vsel %vm700_vm2, %v3404_v27, %v3982_v34  ;;  %v489_v44 = vrot.slane %v487_v25, 1  ;;  %v3406_v34 = vld [vmem:[%s3497_s19 + $0x48] sm:$0xff]  }
  0xad   : > { %v3996_v47 = vpop.permute.xlu1 %1808  ;;  %v1324_v24 = vsel %vm733_vm3, %v1292_v36, %v1260_v49 }
  0xae   : > { %1367 = vrot.lane.b32.xlu0 %v1320_v50, %s3451_s28  ;;  %v1921_v35 = vsel %vm700_vm2, %v3406_v34, %v3996_v47  ;;  %v478_v47 = vsel %vm394_vm1, %v473_v40, %v477_v41  ;;  %v490_v45 = vsel %vm394_vm1, %v485_v43, %v489_v44  ;;  %v644_v34 = vrot.slane %v4063_v59, 1 }
  0xaf   : > { %1369 = vrot.lane.b32.xlu1 %v1322_v51, %s3451_s28 }
  0xb0   : > { %v1262_v63 = vpop.permute.xlu0 %1261 }
  0xb1   : > { %v1811_v62 = vpop.permute.xlu1 %1810  ;;  %v1326_v39 = vsel %vm733_vm3, %v1294_v32, %v1262_v63 }
  0xb2   : > { %1996 = vrot.lane.b32.xlu0 %v1949_v58, %s3452_s29  ;;  %v1923_v50 = vsel %vm700_vm2, %v3407_v42, %v1811_v62  ;;  %v4066_v62 = vld [vmem:[%s3497_s19 + $0x6c] sm:$0xff]  }
  0xb3   : > { %1998 = vrot.lane.b32.xlu1 %v1951_v0, %s3452_s29  ;;  %v3378_v0 = vld [vmem:[%s3497_s19 + $0x68] ss:$0 sps:$4 sm:$0x11]   ;;  %v506_v7 = vshll.u32 %v4066_v62, 16 }
  0xb4   : > { %v1889_v57 = vpop.permute.xlu0 %1888  ;;  %v499_v14 = vshll.u32 %v3378_v0, 16 }
  0xb5   : > { %v1891_v11 = vpop.permute.xlu1 %1890  ;;  %v1953_v52 = vsel %vm733_vm3, %v1921_v35, %v1889_v57  ;;  %v492_v57 = vshrl.u32 %v4063_v59, 16  ;;  %v508_v16 = vrot.slane %v506_v7, 1  ;;  %v645_v35 = vrot.slane %v3378_v0, 1 }
  0xb6   : > { %595 = vrot.lane.b32.xlu0 %v454_v61, %s3450_s21  ;;  %v1955_v53 = vsel %vm733_vm3, %v1923_v50, %v1891_v11  ;;  %v494_v61 = vshll.u32 %v4063_v59, 16  ;;  %v501_v33 = vrot.slane %v499_v14, 1  ;;  %v647_v50 = vrot.slane %v4066_v62, 1  ;;  %v3412_v14 = vld [vmem:[%s3497_s19 + $0x78] sm:$0xff]  }
  0xb7   : > { %597 = vrot.lane.b32.xlu1 %v466_v4, %s3450_s21  ;;  %v3380_v4 = vld [vmem:[%s3497_s19 + $0x74] ss:$0 sps:$4 sm:$0x11]  }
  0xb8   : > { %v4031_v10 = vpop.permute.xlu0 %1183  ;;  %v511_v5 = vshll.u32 %v3380_v4, 16 }
  0xb9   : > { %v4029_v6 = vpop.permute.xlu1 %1185  ;;  %v1296_v23 = vsel %vm700_vm2, %v3409_v21, %v4031_v10 }
  0xba   : > { %676 = vrot.lane.b32.xlu0 %v634_v12, %s3449_s20  ;;  %v496_v12 = vrot.slane %v494_v61, 1  ;;  %v1298_v17 = vsel %vm700_vm2, %v3408_v20, %v4029_v6  ;;  %v3410_v6 = vld [vmem:[%s3497_s19 + $0x60] sm:$0xff]  }
  0xbb   : > { %678 = vrot.lane.b32.xlu1 %v637_v15, %s3449_s20  ;;  %v504_v15 = vshrl.u32 %v4066_v62, 16 }
  0xbc   : > { %v1264_v38 = vpop.permute.xlu0 %1263  ;;  %v497_v32 = vor.u32 %v496_v12, %v492_v57  ;;  %v535_v57 = vshll.u32 %v3384_v56, 16 }
  0xbd   : > { %v4043_v37 = vpop.permute.xlu1 %1812  ;;  %v1328_v25 = vsel %vm733_vm3, %v1296_v23, %v1264_v38  ;;  %v509_v36 = vor.u32 %v508_v16, %v504_v15  ;;  %v3413_v15 = vld [vmem:[%s3497_s19 + $0x6c] sm:$0xff]  }
  0xbe   : > { %1371 = vrot.lane.b32.xlu0 %v1324_v24, %s3451_s28  ;;  %v513_v24 = vrot.slane %v511_v5, 1  ;;  %v1925_v10 = vsel %vm700_vm2, %v3410_v6, %v4043_v37  ;;  %v502_v37 = vsel %vm394_vm1, %v497_v32, %v501_v33  ;;  %v537_v32 = vrot.slane %v535_v57, 1  ;;  %v3415_v33 = vld [vmem:[%s3497_s19 + $0x84] sm:$0xff]  }
  0xbf   : > { %1373 = vrot.lane.b32.xlu1 %v1326_v39, %s3451_s28  ;;  %v3411_v39 = vld [vmem:[%s3497_s19 + $0x6c] sm:$0xff]   ;;  %v3417_v57 = vld [vmem:[%s3497_s19 + $0x84] sm:$0xff]  }
  0xc0   : > { %v1266_v51 = vpop.permute.xlu0 %1265  ;;  %v514_v42 = vsel %vm394_vm1, %v509_v36, %v513_v24 }
  0xc1   : > { %v1815_v49 = vpop.permute.xlu1 %1814  ;;  %v1330_v27 = vsel %vm733_vm3, %v1298_v17, %v1266_v51  ;;  %v4110_v51 = vld [vmem:[%s3497_s19 + $0x78] sm:$0xff]  }
  0xc2   : > { %2000 = vrot.lane.b32.xlu0 %v1953_v52, %s3452_s29  ;;  %v1927_v40 = vsel %vm700_vm2, %v3411_v39, %v1815_v49  ;;  %v648_v49 = vrot.slane %v3380_v4, 1  ;;  %v4113_v52 = vld [vmem:[%s3497_s19 + $0x84] sm:$0xff]   ;;  %v518_v46 = vshll.u32 %v4110_v51, 16  ;;  %v523_v4 = vshll.u32 %v3382_v55, 16 }
  0xc3   : > { %2002 = vrot.lane.b32.xlu1 %v1955_v53, %s3452_s29  ;;  %v650_v39 = vrot.slane %v4110_v51, 1 }
  0xc4   : > { %v1893_v58 = vpop.permute.xlu0 %1892  ;;  %v520_v61 = vrot.slane %v518_v46, 1 }
  0xc5   : > { %v1895_v63 = vpop.permute.xlu1 %1894  ;;  %v1957_v43 = vsel %vm733_vm3, %v1925_v10, %v1893_v58 }
  0xc6   : > { %599 = vrot.lane.b32.xlu0 %v478_v47, %s3450_s21  ;;  %v1959_v44 = vsel %vm733_vm3, %v1927_v40, %v1895_v63  ;;  %v646_v47 = vsel %vm619_vm0, %v644_v34, %v645_v35  ;;  %v530_v63 = vshll.u32 %v4113_v52, 16  ;;  %v651_v40 = vrot.slane %v3382_v55, 1  ;;  %v4160_v34 = vld [vmem:[%s3497_s19 + $0x9c] sm:$0xff]  }
  0xc7   : > { %601 = vrot.lane.b32.xlu1 %v490_v45, %s3450_s21  ;;  %v649_v45 = vsel %vm619_vm0, %v647_v50, %v648_v49  ;;  %v554_v55 = vshll.u32 %v4160_v34, 16 }
  0xc8   : > { %v4078_v11 = vpop.permute.xlu0 %1187  ;;  %v532_v7 = vrot.slane %v530_v63, 1  ;;  %v652_v50 = vsel %vm619_vm0, %v650_v39, %v651_v40  ;;  %v4204_v40 = vld [vmem:[%s3497_s19 + $0xa8] sm:$0xff]  }
  0xc9   : > { %v4076_v8 = vpop.permute.xlu1 %1189  ;;  %v1300_v16 = vsel %vm700_vm2, %v3413_v15, %v4078_v11 }
  0xca   : > { %680 = vrot.lane.b32.xlu0 %v640_v1, %s3449_s20  ;;  %v516_v1 = vshrl.u32 %v4110_v51, 16  ;;  %v1302_v12 = vsel %vm700_vm2, %v3412_v14, %v4076_v8  ;;  %v3414_v8 = vld [vmem:[%s3497_s19 + $0x78] sm:$0xff]  }
  0xcb   : > { %682 = vrot.lane.b32.xlu1 %v643_v2, %s3449_s20  ;;  %v528_v2 = vshrl.u32 %v4113_v52, 16 }
  0xcc   : > { %v1268_v28 = vpop.permute.xlu0 %1267  ;;  %v521_v23 = vor.u32 %v520_v61, %v516_v1 }
  0xcd   : > { %v4090_v26 = vpop.permute.xlu1 %1816  ;;  %v1332_v17 = vsel %vm733_vm3, %v1300_v16, %v1268_v28 }
  0xce   : > { %1375 = vrot.lane.b32.xlu0 %v1328_v25, %s3451_s28  ;;  %v525_v25 = vrot.slane %v523_v4, 1  ;;  %v1929_v11 = vsel %vm700_vm2, %v3414_v8, %v4090_v26  ;;  %v3416_v4 = vld [vmem:[%s3497_s19 + $0x90] sm:$0xff]  }
  0xcf   : > { %1377 = vrot.lane.b32.xlu1 %v1330_v27, %s3451_s28  ;;  %v533_v27 = vor.u32 %v532_v7, %v528_v2  ;;  %v556_v2 = vrot.slane %v554_v55, 1  ;;  %v564_v55 = vshrl.u32 %v4204_v40, 16 }
  0xd0   : > { %v1270_v41 = vpop.permute.xlu0 %1269  ;;  %v526_v26 = vsel %vm394_vm1, %v521_v23, %v525_v25 }
  0xd1   : > { %v1819_v38 = vpop.permute.xlu1 %1818  ;;  %v1334_v21 = vsel %vm733_vm3, %v1302_v12, %v1270_v41  ;;  %v538_v41 = vsel %vm394_vm1, %v533_v27, %v537_v32  ;;  %v3419_v32 = vld [vmem:[%s3497_s19 + $0x9c] sm:$0xff]  }
  0xd2   : > { %2004 = vrot.lane.b32.xlu0 %v1957_v43, %s3452_s29  ;;  %v1931_v36 = vsel %vm700_vm2, %v3415_v33, %v1819_v38  ;;  %v653_v38 = vrot.slane %v4113_v52, 1  ;;  %v654_v43 = vrot.slane %v3384_v56, 1  ;;  %v552_v56 = vshrl.u32 %v4160_v34, 16 }
  0xd3   : > { %2006 = vrot.lane.b32.xlu1 %v1959_v44, %s3452_s29  ;;  %v4157_v44 = vld [vmem:[%s3497_s19 + $0x90] sm:$0xff]  }
  0xd4   : > { %v1897_v54 = vpop.permute.xlu0 %1896  ;;  %v655_v49 = vsel %vm619_vm0, %v653_v38, %v654_v43  ;;  %v540_v46 = vshrl.u32 %v4157_v44, 16  ;;  %v557_v25 = vor.u32 %v556_v2, %v552_v56  ;;  %v3390_v43 = vld [vmem:[%s3497_s19 + $0xb0] ss:$0 sps:$4 sm:$0x11]  }
  0xd5   : > { %v1899_v53 = vpop.permute.xlu1 %1898  ;;  %v1961_v10 = vsel %vm733_vm3, %v1929_v11, %v1897_v54  ;;  %v3388_v54 = vld [vmem:[%s3497_s19 + $0xa4] ss:$0 sps:$4 sm:$0x11]  }
  0xd6   : > { %603 = vrot.lane.b32.xlu0 %v502_v37, %s3450_s21  ;;  %v1963_v6 = vsel %vm733_vm3, %v1931_v36, %v1899_v53  ;;  %v542_v53 = vshll.u32 %v4157_v44, 16  ;;  %v559_v61 = vshll.u32 %v3388_v54, 16  ;;  %v660_v39 = vrot.slane %v3388_v54, 1 }
  0xd7   : > { %605 = vrot.lane.b32.xlu1 %v514_v42, %s3450_s21  ;;  %v3386_v42 = vld [vmem:[%s3497_s19 + $0x98] ss:$0 sps:$4 sm:$0x11]  }
  0xd8   : > { %v4125_v0 = vpop.permute.xlu0 %1191  ;;  %v544_v63 = vrot.slane %v542_v53, 1  ;;  %v547_v1 = vshll.u32 %v3386_v42, 16  ;;  %v561_v27 = vrot.slane %v559_v61, 1  ;;  %v3420_v61 = vld [vmem:[%s3497_s19 + $0xa8] sm:$0xff]  }
  0xd9   : > { %v4123_v58 = vpop.permute.xlu1 %1193  ;;  %v1304_v14 = vsel %vm700_vm2, %v3417_v57, %v4125_v0 }
  0xda   : > { %684 = vrot.lane.b32.xlu0 %v646_v47, %s3449_s20  ;;  %v1306_v7 = vsel %vm700_vm2, %v3416_v4, %v4123_v58  ;;  %v549_v23 = vrot.slane %v547_v1, 1  ;;  %v3418_v58 = vld [vmem:[%s3497_s19 + $0x90] sm:$0xff]  }
  0xdb   : > { %686 = vrot.lane.b32.xlu1 %v649_v45, %s3449_s20 }
  0xdc   : > { %v1272_v20 = vpop.permute.xlu0 %1271 }
  0xdd   : > { %v4137_v5 = vpop.permute.xlu1 %1820  ;;  %v1336_v16 = vsel %vm733_vm3, %v1304_v14, %v1272_v20 }
  0xde   : > { %1379 = vrot.lane.b32.xlu0 %v1332_v17, %s3451_s28  ;;  %v1933_v0 = vsel %vm700_vm2, %v3418_v58, %v4137_v5 }
  0xdf   : > { %1381 = vrot.lane.b32.xlu1 %v1334_v21, %s3451_s28  ;;  %v545_v21 = vor.u32 %v544_v63, %v540_v46  ;;  %v571_v46 = vshll.u32 %v3390_v43, 16 }
  0xe0   : > { %v1274_v24 = vpop.permute.xlu0 %1273 }
  0xe1   : > { %v1823_v28 = vpop.permute.xlu1 %1822  ;;  %v1338_v17 = vsel %vm733_vm3, %v1306_v7, %v1274_v24  ;;  %v656_v24 = vrot.slane %v4157_v44, 1  ;;  %v550_v5 = vsel %vm394_vm1, %v545_v21, %v549_v23  ;;  %v3421_v7 = vld [vmem:[%s3497_s19 + $0x9c] sm:$0xff]  }
  0xe2   : > { %2008 = vrot.lane.b32.xlu0 %v1961_v10, %s3452_s29  ;;  %v1935_v8 = vsel %vm700_vm2, %v3419_v32, %v1823_v28  ;;  %v562_v10 = vsel %vm394_vm1, %v557_v25, %v561_v27  ;;  %v659_v28 = vrot.slane %v4160_v34, 1  ;;  %v573_v25 = vrot.slane %v571_v46, 1  ;;  %v3423_v32 = vld [vmem:[%s3497_s19 + $0xb4] sm:$0xff]  }
  0xe3   : > { %2010 = vrot.lane.b32.xlu1 %v1963_v6, %s3452_s29  ;;  %v657_v6 = vrot.slane %v3386_v42, 1  ;;  %v566_v42 = vshll.u32 %v4204_v40, 16 }
  0xe4   : > { %v1901_v37 = vpop.permute.xlu0 %1900 }
  0xe5   : > { %v1903_v35 = vpop.permute.xlu1 %1902  ;;  %v1965_v36 = vsel %vm733_vm3, %v1933_v0, %v1901_v37  ;;  %v661_v37 = vsel %vm619_vm0, %v659_v28, %v660_v39  ;;  %v568_v56 = vrot.slane %v566_v42, 1  ;;  %v3422_v0 = vld [vmem:[%s3497_s19 + $0xa8] sm:$0xff]  }
  0xe6   : > { %607 = vrot.lane.b32.xlu0 %v526_v26, %s3450_s21  ;;  %v1967_v33 = vsel %vm733_vm3, %v1935_v8, %v1903_v35  ;;  %v4207_v26 = vld [vmem:[%s3497_s19 + $0xb4] sm:$0xff]   ;;  %v658_v35 = vsel %vm619_vm0, %v656_v24, %v657_v6  ;;  %v663_v24 = vrot.slane %v3390_v43, 1 }
  0xe7   : > { %609 = vrot.lane.b32.xlu1 %v538_v41, %s3450_s21  ;;  %v576_v63 = vshrl.u32 %v4207_v26, 16  ;;  %v569_v23 = vor.u32 %v568_v56, %v564_v55 }
  0xe8   : > { %v4172_v45 = vpop.permute.xlu0 %1195 }
  0xe9   : > { %v4170_v47 = vpop.permute.xlu1 %1197  ;;  %v1308_v57 = vsel %vm700_vm2, %v3421_v7, %v4172_v45  ;;  %v574_v6 = vsel %vm394_vm1, %v569_v23, %v573_v25 }
  0xea   : > { %688 = vrot.lane.b32.xlu0 %v652_v50, %s3449_s20  ;;  %v3392_v50 = vld [vmem:[%s3497_s19 + $0xbc] ss:$0 sps:$4 sm:$0x11]   ;;  %v1310_v4 = vsel %vm700_vm2, %v3420_v61, %v4170_v47 }
  0xeb   : > { %690 = vrot.lane.b32.xlu1 %v655_v49, %s3449_s20  ;;  %v578_v49 = vshll.u32 %v4207_v26, 16  ;;  %v583_v2 = vshll.u32 %v3392_v50, 16 }
  0xec   : > { %v1276_v15 = vpop.permute.xlu0 %1275 }
  0xed   : > { %v4184_v12 = vpop.permute.xlu1 %1824  ;;  %v580_v1 = vrot.slane %v578_v49, 1  ;;  %v585_v58 = vrot.slane %v583_v2, 1 }
  0xee   : > { %1383 = vrot.lane.b32.xlu0 %v1336_v16, %s3451_s28  ;;  %v1937_v47 = vsel %vm700_vm2, %v3422_v0, %v4184_v12 }
  0xef   : > { %1385 = vrot.lane.b32.xlu1 %v1338_v17, %s3451_s28  ;;  %v1340_v17 = vsel %vm733_vm3, %v1308_v57, %v1276_v15  ;;  %v581_v27 = vor.u32 %v580_v1, %v576_v63 }
  0xf0   : > { %v1278_v11 = vpop.permute.xlu0 %1277 }
  0xf1   : > { %v1827_v20 = vpop.permute.xlu1 %1826  ;;  %v1342_v21 = vsel %vm733_vm3, %v1310_v4, %v1278_v11  ;;  %v586_v12 = vsel %vm394_vm1, %v581_v27, %v585_v58 }
  0xf2   : > { %2012 = vrot.lane.b32.xlu0 %v1965_v36, %s3452_s29  ;;  %v1939_v45 = vsel %vm700_vm2, %v3423_v32, %v1827_v20  ;;  %v662_v36 = vrot.slane %v4204_v40, 1  ;;  %v665_v20 = vrot.slane %v4207_v26, 1 }
  0xf3   : > { %2014 = vrot.lane.b32.xlu1 %v1967_v33, %s3452_s29 }
  0xf4   : > { %v1905_v38 = vpop.permute.xlu0 %1904 }
  0xf5   : > { %v1907_v41 = vpop.permute.xlu1 %1906  ;;  %v1969_v11 = vsel %vm733_vm3, %v1937_v47, %v1905_v38  ;;  %v664_v38 = vsel %vm619_vm0, %v662_v36, %v663_v24 }
  0xf6   : > { %611 = vrot.lane.b32.xlu0 %v550_v5, %s3450_s21  ;;  %v1971_v15 = vsel %vm733_vm3, %v1939_v45, %v1907_v41  ;;  %v666_v5 = vrot.slane %v3392_v50, 1 }
  0xf7   : > { %613 = vrot.lane.b32.xlu1 %v562_v10, %s3450_s21 }
  0xf8   : > { %v1200_v53 = vpop.permute.xlu0 %1199  ;;  %v667_v43 = vsel %vm619_vm0, %v665_v20, %v666_v5 }
  0xf9   : > { %v588_v54 = vpop.permute.xlu1 %587 }
  0xfa   : > { %692 = vrot.lane.b32.xlu0 %v658_v35, %s3449_s20  ;;  %v702_v10 = vsel %vm700_vm2, %v3795_v60, %v588_v54  ;;  %v3424_v60 = vld [vmem:[%s3497_s19 + $0xb4] sm:$0xff]  }
  0xfb   : > { %694 = vrot.lane.b32.xlu1 %v661_v37, %s3449_s20  ;;  %v1312_v42 = vsel %vm700_vm2, %v3424_v60, %v1200_v53 }
  0xfc   : > { %v1202_v14 = vpop.permute.xlu0 %1201 }
  0xfd   : > { %v1280_v16 = vpop.permute.xlu1 %1279  ;;  %v1314_v50 = vsel %vm700_vm2, %v3815_v13, %v1202_v14 }
  0xfe   : > { %1387 = vrot.lane.b32.xlu0 %v1340_v17, %s3451_s28  ;;  %v1344_v46 = vsel %vm733_vm3, %v1312_v42, %v1280_v16 }
  0xff   : > { %1389 = vrot.lane.b32.xlu1 %v1342_v21, %s3451_s28 }
 0x100   : > { %v1829_v8 = vpop.permute.xlu0 %1828 }
 0x101   : > { %v590_v33 = vpop.permute.xlu1 %589  ;;  %v1941_v13 = vsel %vm700_vm2, %v3823_v19, %v1829_v8 }
 0x102   : > { %2016 = vrot.lane.b32.xlu0 %v1969_v11, %s3452_s29  ;;  %v704_v49 = vsel %vm700_vm2, %v3838_v31, %v590_v33 }
 0x103   : > { %2018 = vrot.lane.b32.xlu1 %v1971_v15, %s3452_s29 }
 0x104   : > { %v669_v28 = vpop.permute.xlu0 %668 }
 0x105   : > { %v1282_v39 = vpop.permute.xlu1 %1281  ;;  %v735_v41 = vsel %vm733_vm3, %v702_v10, %v669_v28 }
 0x106   : > { %783 = vst.msk [vmem:[#allocation2] sm:$0xff] %vm782_vm5, %v735_v41  ;;  %615 = vrot.lane.b32.xlu0 %v574_v6, %s3450_s21  ;;  %v1346_v56 = vsel %vm733_vm3, %v1314_v50, %v1282_v39 }
 0x107   : > { %617 = vrot.lane.b32.xlu1 %v586_v12, %s3450_s21 }
 0x108   : > { %v1831_v35 = vpop.permute.xlu0 %1830 }
 0x109   : > { %v1909_v37 = vpop.permute.xlu1 %1908  ;;  %v1943_v31 = vsel %vm700_vm2, %v3859_v48, %v1831_v35 }
 0x10a   : > { %696 = vrot.lane.b32.xlu0 %v664_v38, %s3449_s20  ;;  %v1973_v2 = vsel %vm733_vm3, %v1941_v13, %v1909_v37 }
 0x10b   : > { %698 = vrot.lane.b32.xlu1 %v667_v43, %s3449_s20 }
 0x10c   : > { %v671_v54 = vpop.permute.xlu0 %670 }
 0x10d   : > { %v1911_v55 = vpop.permute.xlu1 %1910  ;;  %v738_v63 = vsel %vm733_vm3, %v704_v49, %v671_v54 }
 0x10e   : > { %784 = vst.msk [vmem:[#allocation2 + $0x8] sm:$0xff] %vm782_vm5, %v738_v63  ;;  %1391 = vrot.lane.b32.xlu0 %v1344_v46, %s3451_s28  ;;  %v1975_v61 = vsel %vm733_vm3, %v1943_v31, %v1911_v55 }
 0x10f   : > { %1393 = vrot.lane.b32.xlu1 %v1346_v56, %s3451_s28 }
 0x110   : > { %v1364_v53 = vpop.permute.xlu0 %1363 }
 0x111   : > { %v1366_v1 = vpop.permute.xlu1 %1365  ;;  %1412 = vst.msk [vmem:[#allocation2] sm:$0xff] %vm1411_vm6, %v1364_v53 }
 0x112   : > { %1413 = vst.msk [vmem:[#allocation2 + $0x8] sm:$0xff] %vm1411_vm6, %v1366_v1  ;;  %2020 = vrot.lane.b32.xlu0 %v1973_v2, %s3452_s29 }
 0x113   : > { %2022 = vrot.lane.b32.xlu1 %v1975_v61, %s3452_s29 }
 0x114   : > { %v1993_v4 = vpop.permute.xlu0 %1992 }
 0x115   : > { %v1995_v19 = vpop.permute.xlu1 %1994  ;;  %2041 = vst.msk [vmem:[#allocation2] sm:$0xff] %vm2040_vm7, %v1993_v4 }
 0x116   : > { %2042 = vst.msk [vmem:[#allocation2 + $0x8] sm:$0xff] %vm2040_vm7, %v1995_v19 }
 0x118   : > { %v592_v48 = vpop.permute.xlu0 %591 }
 0x119   : > { %v594_v7 = vpop.permute.xlu1 %593  ;;  %v706_v57 = vsel %vm700_vm2, %v3904_v29, %v592_v48 }
 0x11a   : > { %v708_v14 = vsel %vm700_vm2, %v3907_v30, %v594_v7 }
 0x11c   : > { %v673_v16 = vpop.permute.xlu0 %672  ;;  %v2057_v21 = vld [vmem:[#allocation2] sm:$0xff] }
 0x11d   : > { %v675_v17 = vpop.permute.xlu1 %674  ;;  %v2058_v23 = vld [vmem:[#allocation2 + $0x8] sm:$0xff]  ;;  %v741_v25 = vsel %vm733_vm3, %v706_v57, %v673_v16  ;;  %3228 = vmatprep.mubr.msk.bf16.mxu0 %vm2093_vm8, %v2057_v21 }
 0x11e   : > { %v744_v27 = vsel %vm733_vm3, %v708_v14, %v675_v17  ;;  %785 = vst.msk [vmem:[#allocation2 + $0x10] sm:$0xff] %vm782_vm5, %v741_v25  ;;  %3229 = vmatmul.mubr.msk.bf16.vlgmr.msra.gmra.mrb[0].mxu0 %vm2093_vm8, %v2058_v23 }
 0x11f   : > { %786 = vst.msk [vmem:[#allocation2 + $0x18] sm:$0xff] %vm782_vm5, %v744_v27 }
 0x120   : > { %v1368_v29 = vpop.permute.xlu0 %1367 }
 0x121   : > { %v1370_v58 = vpop.permute.xlu1 %1369  ;;  %1414 = vst.msk [vmem:[#allocation2 + $0x10] sm:$0xff] %vm1411_vm6, %v1368_v29 }
 0x122   : > { %1415 = vst.msk [vmem:[#allocation2 + $0x18] sm:$0xff] %vm1411_vm6, %v1370_v58 }
 0x124   : > { %v1997_v30 = vpop.permute.xlu0 %1996 }
 0x125   : > { %v1999_v0 = vpop.permute.xlu1 %1998  ;;  %2043 = vst.msk [vmem:[#allocation2 + $0x10] sm:$0xff] %vm2040_vm7, %v1997_v30 }
 0x126   : > { %2044 = vst.msk [vmem:[#allocation2 + $0x18] sm:$0xff] %vm2040_vm7, %v1999_v0 }
 0x128   : > { %v596_v47 = vpop.permute.xlu0 %595 }
 0x129   : > { %v598_v32 = vpop.permute.xlu1 %597  ;;  %v710_v45 = vsel %vm700_vm2, %v3965_v18, %v596_v47 }
 0x12a   : > { %v712_v8 = vsel %vm700_vm2, %v3972_v22, %v598_v32 }
 0x12c   : > { %v677_v33 = vpop.permute.xlu0 %676  ;;  %v2059_v11 = vld [vmem:[#allocation2 + $0x10] sm:$0xff] }
 0x12d   : > { %v679_v15 = vpop.permute.xlu1 %678  ;;  %v2060_v36 = vld [vmem:[#allocation2 + $0x18] sm:$0xff]  ;;  %v747_v24 = vsel %vm733_vm3, %v710_v45, %v677_v33  ;;  %3232 = vmatprep.mubr.msk.bf16.mxu0 %vm2093_vm8, %v2059_v11 }
 0x12e   : > { %v750_v6 = vsel %vm733_vm3, %v712_v8, %v679_v15  ;;  %787 = vst.msk [vmem:[#allocation2 + $0x20] sm:$0xff] %vm782_vm5, %v747_v24  ;;  %3233 = vmatmul.mubr.msk.bf16.gmra.mrb[4].mxu0 %vm2093_vm8, %v2060_v36 }
 0x12f   : > { %788 = vst.msk [vmem:[#allocation2 + $0x28] sm:$0xff] %vm782_vm5, %v750_v6 }
 0x130   : > { %v1372_v18 = vpop.permute.xlu0 %1371 }
 0x131   : > { %v1374_v12 = vpop.permute.xlu1 %1373  ;;  %1416 = vst.msk [vmem:[#allocation2 + $0x20] sm:$0xff] %vm1411_vm6, %v1372_v18 }
 0x132   : > { %1417 = vst.msk [vmem:[#allocation2 + $0x28] sm:$0xff] %vm1411_vm6, %v1374_v12 }
 0x134   : > { %v2001_v22 = vpop.permute.xlu0 %2000 }
 0x135   : > { %v2003_v20 = vpop.permute.xlu1 %2002  ;;  %2045 = vst.msk [vmem:[#allocation2 + $0x20] sm:$0xff] %vm2040_vm7, %v2001_v22 }
 0x136   : > { %2046 = vst.msk [vmem:[#allocation2 + $0x28] sm:$0xff] %vm2040_vm7, %v2003_v20 }
 0x138   : > { %v600_v5 = vpop.permute.xlu0 %599 }
 0x139   : > { %v602_v10 = vpop.permute.xlu1 %601  ;;  %v714_v28 = vsel %vm700_vm2, %v4016_v9, %v600_v5 }
 0x13a   : > { %v716_v39 = vsel %vm700_vm2, %v4019_v3, %v602_v10 }
 0x13c   : > { %v681_v41 = vpop.permute.xlu0 %680  ;;  %v2061_v43 = vld [vmem:[#allocation2 + $0x20] sm:$0xff] }
 0x13d   : > { %v683_v38 = vpop.permute.xlu1 %682  ;;  %v2062_v35 = vld [vmem:[#allocation2 + $0x28] sm:$0xff]  ;;  %v753_v37 = vsel %vm733_vm3, %v714_v28, %v681_v41  ;;  %3236 = vmatprep.mubr.msk.bf16.mxu0 %vm2093_vm8, %v2061_v43 }
 0x13e   : > { %v756_v60 = vsel %vm733_vm3, %v716_v39, %v683_v38  ;;  %789 = vst.msk [vmem:[#allocation2 + $0x30] sm:$0xff] %vm782_vm5, %v753_v37  ;;  %3237 = vmatmul.mubr.msk.bf16.gmra.mrb[8].mxu0 %vm2093_vm8, %v2062_v35 }
 0x13f   : > { %790 = vst.msk [vmem:[#allocation2 + $0x38] sm:$0xff] %vm782_vm5, %v756_v60 }
 0x140   : > { %v1376_v9 = vpop.permute.xlu0 %1375 }
 0x141   : > { %v1378_v42 = vpop.permute.xlu1 %1377  ;;  %1418 = vst.msk [vmem:[#allocation2 + $0x30] sm:$0xff] %vm1411_vm6, %v1376_v9 }
 0x142   : > { %1419 = vst.msk [vmem:[#allocation2 + $0x38] sm:$0xff] %vm1411_vm6, %v1378_v42 }
 0x144   : > { %v2005_v3 = vpop.permute.xlu0 %2004 }
 0x145   : > { %v2007_v50 = vpop.permute.xlu1 %2006  ;;  %2047 = vst.msk [vmem:[#allocation2 + $0x30] sm:$0xff] %vm2040_vm7, %v2005_v3 }
 0x146   : > { %2048 = vst.msk [vmem:[#allocation2 + $0x38] sm:$0xff] %vm2040_vm7, %v2007_v50 }
 0x148   : > { %v604_v49 = vpop.permute.xlu0 %603 }
 0x149   : > { %v606_v54 = vpop.permute.xlu1 %605  ;;  %v718_v55 = vsel %vm700_vm2, %v4063_v59, %v604_v49 }
 0x14a   : > { %v720_v46 = vsel %vm700_vm2, %v4066_v62, %v606_v54 }
 0x14c   : > { %v685_v56 = vpop.permute.xlu0 %684  ;;  %v2063_v13 = vld [vmem:[#allocation2 + $0x30] sm:$0xff] }
 0x14d   : > { %v687_v63 = vpop.permute.xlu1 %686  ;;  %v2064_v31 = vld [vmem:[#allocation2 + $0x38] sm:$0xff]  ;;  %v759_v53 = vsel %vm733_vm3, %v718_v55, %v685_v56  ;;  %3240 = vmatprep.mubr.msk.bf16.mxu0 %vm2093_vm8, %v2063_v13 }
 0x14e   : > { %v762_v1 = vsel %vm733_vm3, %v720_v46, %v687_v63  ;;  %791 = vst.msk [vmem:[#allocation2 + $0x40] sm:$0xff] %vm782_vm5, %v759_v53  ;;  %3241 = vmatmul.mubr.msk.bf16.gmra.mrb[12].mxu0 %vm2093_vm8, %v2064_v31 }
 0x14f   : > { %792 = vst.msk [vmem:[#allocation2 + $0x48] sm:$0xff] %vm782_vm5, %v762_v1 }
 0x150   : > { %v1380_v59 = vpop.permute.xlu0 %1379 }
 0x151   : > { %v1382_v2 = vpop.permute.xlu1 %1381  ;;  %1420 = vst.msk [vmem:[#allocation2 + $0x40] sm:$0xff] %vm1411_vm6, %v1380_v59 }
 0x152   : > { %1421 = vst.msk [vmem:[#allocation2 + $0x48] sm:$0xff] %vm1411_vm6, %v1382_v2 }
 0x154   : > { %v2009_v62 = vpop.permute.xlu0 %2008 }
 0x155   : > { %v2011_v61 = vpop.permute.xlu1 %2010  ;;  %2049 = vst.msk [vmem:[#allocation2 + $0x40] sm:$0xff] %vm2040_vm7, %v2009_v62 }
 0x156   : > { %2050 = vst.msk [vmem:[#allocation2 + $0x48] sm:$0xff] %vm2040_vm7, %v2011_v61 }
 0x158   : > { %v608_v4 = vpop.permute.xlu0 %607 }
 0x159   : > { %v610_v19 = vpop.permute.xlu1 %609  ;;  %v722_v48 = vsel %vm700_vm2, %v4110_v51, %v608_v4 }
 0x15a   : > { %v724_v7 = vsel %vm700_vm2, %v4113_v52, %v610_v19 }
 0x15c   : > { %v689_v57 = vpop.permute.xlu0 %688  ;;  %v2065_v16 = vld [vmem:[#allocation2 + $0x40] sm:$0xff] }
 0x15d   : > { %v691_v14 = vpop.permute.xlu1 %690  ;;  %v2066_v17 = vld [vmem:[#allocation2 + $0x48] sm:$0xff]  ;;  %v765_v21 = vsel %vm733_vm3, %v722_v48, %v689_v57  ;;  %3244 = vmatprep.mubr.msk.bf16.mxu1 %vm2093_vm8, %v2065_v16 }
 0x15e   : > { %v768_v23 = vsel %vm733_vm3, %v724_v7, %v691_v14  ;;  %793 = vst.msk [vmem:[#allocation2 + $0x50] sm:$0xff] %vm782_vm5, %v765_v21  ;;  %3245 = vmatmul.mubr.msk.bf16.vlgmr.msra.gmra.mrb[0].mxu1 %vm2093_vm8, %v2066_v17 }
 0x15f   : > { %794 = vst.msk [vmem:[#allocation2 + $0x58] sm:$0xff] %vm782_vm5, %v768_v23 }
 0x160   : > { %v1384_v51 = vpop.permute.xlu0 %1383 }
 0x161   : > { %v1386_v25 = vpop.permute.xlu1 %1385  ;;  %1422 = vst.msk [vmem:[#allocation2 + $0x50] sm:$0xff] %vm1411_vm6, %v1384_v51 }
 0x162   : > { %1423 = vst.msk [vmem:[#allocation2 + $0x58] sm:$0xff] %vm1411_vm6, %v1386_v25 }
 0x164   : > { %v2013_v52 = vpop.permute.xlu0 %2012 }
 0x165   : > { %v2015_v27 = vpop.permute.xlu1 %2014  ;;  %2051 = vst.msk [vmem:[#allocation2 + $0x50] sm:$0xff] %vm2040_vm7, %v2013_v52 }
 0x166   : > { %2052 = vst.msk [vmem:[#allocation2 + $0x58] sm:$0xff] %vm2040_vm7, %v2015_v27 }
 0x168   : > { %v612_v29 = vpop.permute.xlu0 %611 }
 0x169   : > { %v614_v58 = vpop.permute.xlu1 %613  ;;  %v726_v30 = vsel %vm700_vm2, %v4157_v44, %v612_v29 }
 0x16a   : > { %v728_v0 = vsel %vm700_vm2, %v4160_v34, %v614_v58 }
 0x16c   : > { %v693_v47 = vpop.permute.xlu0 %692  ;;  %v2067_v45 = vld [vmem:[#allocation2 + $0x50] sm:$0xff] }
 0x16d   : > { %v695_v32 = vpop.permute.xlu1 %694  ;;  %v2068_v8 = vld [vmem:[#allocation2 + $0x58] sm:$0xff]  ;;  %v771_v33 = vsel %vm733_vm3, %v726_v30, %v693_v47  ;;  %3248 = vmatprep.mubr.msk.bf16.mxu1 %vm2093_vm8, %v2067_v45 }
 0x16e   : > { %v774_v15 = vsel %vm733_vm3, %v728_v0, %v695_v32  ;;  %795 = vst.msk [vmem:[#allocation2 + $0x60] sm:$0xff] %vm782_vm5, %v771_v33  ;;  %3249 = vmatmul.mubr.msk.bf16.gmra.mrb[4].mxu1 %vm2093_vm8, %v2068_v8 }
 0x16f   : > { %796 = vst.msk [vmem:[#allocation2 + $0x68] sm:$0xff] %vm782_vm5, %v774_v15 }
 0x170   : > { %v1388_v44 = vpop.permute.xlu0 %1387 }
 0x171   : > { %v1390_v11 = vpop.permute.xlu1 %1389  ;;  %1424 = vst.msk [vmem:[#allocation2 + $0x60] sm:$0xff] %vm1411_vm6, %v1388_v44 }
 0x172   : > { %1425 = vst.msk [vmem:[#allocation2 + $0x68] sm:$0xff] %vm1411_vm6, %v1390_v11 }
 0x174   : > { %v2017_v34 = vpop.permute.xlu0 %2016 }
 0x175   : > { %v2019_v36 = vpop.permute.xlu1 %2018  ;;  %2053 = vst.msk [vmem:[#allocation2 + $0x60] sm:$0xff] %vm2040_vm7, %v2017_v34 }
 0x176   : > { %2054 = vst.msk [vmem:[#allocation2 + $0x68] sm:$0xff] %vm2040_vm7, %v2019_v36 }
 0x178   : > { %v616_v24 = vpop.permute.xlu0 %615 }
 0x179   : > { %v618_v6 = vpop.permute.xlu1 %617  ;;  %v730_v18 = vsel %vm700_vm2, %v4204_v40, %v616_v24 }
 0x17a   : > { %v732_v12 = vsel %vm700_vm2, %v4207_v26, %v618_v6 }
 0x17c   : > { %v697_v22 = vpop.permute.xlu0 %696  ;;  %v2069_v5 = vld [vmem:[#allocation2 + $0x60] sm:$0xff] }
 0x17d   : > { %v699_v20 = vpop.permute.xlu1 %698  ;;  %v2070_v10 = vld [vmem:[#allocation2 + $0x68] sm:$0xff]  ;;  %v777_v28 = vsel %vm733_vm3, %v730_v18, %v697_v22  ;;  %3252 = vmatprep.mubr.msk.bf16.mxu1 %vm2093_vm8, %v2069_v5 }
 0x17e   : > { %v780_v39 = vsel %vm733_vm3, %v732_v12, %v699_v20  ;;  %797 = vst.msk [vmem:[#allocation2 + $0x70] sm:$0xff] %vm782_vm5, %v777_v28  ;;  %3253 = vmatmul.mubr.msk.bf16.gmra.mrb[8].mxu1 %vm2093_vm8, %v2070_v10 }
 0x17f   : > { %798 = vst.msk [vmem:[#allocation2 + $0x78] sm:$0xff] %vm782_vm5, %v780_v39 }
 0x180   : > { %v1392_v40 = vpop.permute.xlu0 %1391 }
 0x181   : > { %v1394_v41 = vpop.permute.xlu1 %1393  ;;  %1426 = vst.msk [vmem:[#allocation2 + $0x70] sm:$0xff] %vm1411_vm6, %v1392_v40 }
 0x182   : > { %1427 = vst.msk [vmem:[#allocation2 + $0x78] sm:$0xff] %vm1411_vm6, %v1394_v41 }
 0x184   : > { %v2021_v26 = vpop.permute.xlu0 %2020 }
 0x185   : > { %v2023_v38 = vpop.permute.xlu1 %2022  ;;  %2055 = vst.msk [vmem:[#allocation2 + $0x70] sm:$0xff] %vm2040_vm7, %v2021_v26 }
 0x186   : > { %2056 = vst.msk [vmem:[#allocation2 + $0x78] sm:$0xff] %vm2040_vm7, %v2023_v38 }
 0x18c   : > { %v2071_v43 = vld [vmem:[#allocation2 + $0x70] sm:$0xff] }
 0x18d   : > { %v2072_v35 = vld [vmem:[#allocation2 + $0x78] sm:$0xff]  ;;  %3256 = vmatprep.mubr.msk.bf16.mxu1 %vm2093_vm8, %v2071_v43 }
 0x18e   : > { %3257 = vmatmul.mubr.msk.bf16.gmra.mrb[12].mxu1 %vm2093_vm8, %v2072_v35 }
 0x1f1   : > { %v3230_v37 = vpop.f32.mrb[0].mxu0 }
 0x1f2   : > { %v3094_v60 = vpack.c.bf16 %v3230_v37, %v3230_v37  ;;  %v2180_v9 = vpop.f32.mrb[1].mxu0 }
 0x1f3   : > { %v3092_v42 = vpack.c.bf16 %v2180_v9, %v2180_v9  ;;  %v3231_v3 = vpop.f32.mrb[2].mxu0 }
 0x1f4   : > { %2438 = vst.msk [vmem:[%s4382_s6 + $0x8] sm:$0xf] %vm2435_vm9, %v3094_v60  ;;  %v3095_v50 = vpack.c.bf16 %v3231_v3, %v3231_v3  ;;  %v2183_v49 = vpop.f32.mrb[3].mxu0 }
 0x1f5   : > { %2436 = vst.msk [vmem:[%s4382_s6] sm:$0xf] %vm2435_vm9, %v3092_v42  ;;  %v3093_v54 = vpack.c.bf16 %v2183_v49, %v2183_v49 }
 0x1f6   : > { %2439 = vst.msk [vmem:[%s4382_s6 + $0xc] sm:$0xf] %vm2435_vm9, %v3095_v50 }
 0x1f7   : > { %2437 = vst.msk [vmem:[%s4382_s6 + $0x4] sm:$0xf] %vm2435_vm9, %v3093_v54 }
 0x1fd   : > { %v3188_v61 = vld [vmem:[%s4382_s6 + $0x8] sm:$0xff]  }
 0x1fe   : > { %v3125_v59 = vld [vmem:[%s4382_s6] sm:$0xff]   ;;  %v3130_v48 = vunpack.c.l.bf16 %v3188_v61  ;;  %v3131_v30 = vunpack.c.h.bf16 %v3188_v61 }
 0x1ff   : > { %v3126_v2 = vunpack.c.l.bf16 %v3125_v59  ;;  %v3127_v62 = vunpack.c.h.bf16 %v3125_v59 }
 0x200   : > { %v2605_v0 = vmul.f32 %v3130_v48, %v3130_v48  ;;  %v2535_v8 = vsel %vm733_vm3, %v3130_v48, 0.0  ;;  %v2606_v15 = vmul.f32 %v3131_v30, %v3131_v30  ;;  %v2537_v36 = vsel %vm733_vm3, %v3131_v30, 0.0 }
 0x201   : > { %v3234_v55 = vpop.f32.mrb[4].mxu0  ;;  %v2603_v4 = vmul.f32 %v3126_v2, %v3126_v2  ;;  %v2604_v19 = vmul.f32 %v3127_v62, %v3127_v62  ;;  %v2532_v7 = vsel %vm733_vm3, %v3126_v2, 0.0  ;;  %v2533_v57 = vsel %vm733_vm3, %v3127_v62, 0.0 }
 0x202   : > { %v3098_v46 = vpack.c.bf16 %v3234_v55, %v3234_v55  ;;  %v2196_v56 = vpop.f32.mrb[5].mxu0  ;;  %v2534_v27 = vadd.f32 %v2533_v57, %v2532_v7  ;;  %v2638_v44 = vsel %vm733_vm3, %v2605_v0, 0.0  ;;  %v2640_v22 = vsel %vm733_vm3, %v2606_v15, 0.0 }
 0x203   : > { %v3096_v63 = vpack.c.bf16 %v2196_v56, %v2196_v56  ;;  %v3235_v13 = vpop.f32.mrb[6].mxu0  ;;  %v2635_v23 = vsel %vm733_vm3, %v2603_v4, 0.0  ;;  %v2636_v51 = vsel %vm733_vm3, %v2604_v19, 0.0 }
 0x204   : > { %2442 = vst.msk [vmem:[%s4382_s6 + $0x18] sm:$0xf] %vm2435_vm9, %v3098_v46  ;;  %v3099_v31 = vpack.c.bf16 %v3235_v13, %v3235_v13  ;;  %v2199_v53 = vpop.f32.mrb[7].mxu0  ;;  %v2637_v45 = vadd.f32 %v2636_v51, %v2635_v23  ;;  %v2536_v33 = vadd.f32 %v2535_v8, %v2534_v27 }
 0x205   : > { %2440 = vst.msk [vmem:[%s4382_s6 + $0x10] sm:$0xf] %vm2435_vm9, %v3096_v63  ;;  %v3097_v1 = vpack.c.bf16 %v2199_v53, %v2199_v53 }
 0x206   : > { %2443 = vst.msk [vmem:[%s4382_s6 + $0x1c] sm:$0xf] %vm2435_vm9, %v3099_v31  ;;  %v2639_v34 = vadd.f32 %v2638_v44, %v2637_v45  ;;  %v2538_v12 = vadd.f32 %v2537_v36, %v2536_v33 }
 0x207   : > { %2441 = vst.msk [vmem:[%s4382_s6 + $0x14] sm:$0xf] %vm2435_vm9, %v3097_v1 }
 0x208   : > { %v2641_v10 = vadd.f32 %v2640_v22, %v2639_v34 }
 0x20d   : > { %v3190_v18 = vld [vmem:[%s4382_s6 + $0x18] sm:$0xff]  }
 0x20e   : > { %v3189_v16 = vld [vmem:[%s4382_s6 + $0x10] sm:$0xff]   ;;  %v3138_v28 = vunpack.c.l.bf16 %v3190_v18  ;;  %v3139_v43 = vunpack.c.h.bf16 %v3190_v18 }
 0x20f   : > { %v3134_v47 = vunpack.c.l.bf16 %v3189_v16  ;;  %v3135_v24 = vunpack.c.h.bf16 %v3189_v16 }
 0x210   : > { %v2609_v9 = vmul.f32 %v3138_v28, %v3138_v28  ;;  %v2543_v56 = vsel %vm733_vm3, %v3138_v28, 0.0  ;;  %v2610_v31 = vmul.f32 %v3139_v43, %v3139_v43  ;;  %v2545_v2 = vsel %vm733_vm3, %v3139_v43, 0.0 }
 0x211   : > { %v3238_v14 = vpop.f32.mrb[8].mxu0  ;;  %v2607_v11 = vmul.f32 %v3134_v47, %v3134_v47  ;;  %v2539_v6 = vsel %vm733_vm3, %v3134_v47, 0.0  ;;  %v2608_v39 = vmul.f32 %v3135_v24, %v3135_v24  ;;  %v2541_v26 = vsel %vm733_vm3, %v3135_v24, 0.0 }
 0x212   : > { %v3102_v17 = vpack.c.bf16 %v3238_v14, %v3238_v14  ;;  %v2212_v21 = vpop.f32.mrb[9].mxu0  ;;  %v2540_v5 = vadd.f32 %v2539_v6, %v2538_v12  ;;  %v2646_v53 = vsel %vm733_vm3, %v2609_v9, 0.0  ;;  %v2648_v48 = vsel %vm733_vm3, %v2610_v31, 0.0 }
 0x213   : > { %v3100_v25 = vpack.c.bf16 %v2212_v21, %v2212_v21  ;;  %v3239_v52 = vpop.f32.mrb[10].mxu0  ;;  %v2642_v20 = vsel %vm733_vm3, %v2607_v11, 0.0  ;;  %v2644_v42 = vsel %vm733_vm3, %v2608_v39, 0.0 }
 0x214   : > { %2446 = vst.msk [vmem:[%s4382_s6 + $0x28] sm:$0xf] %vm2435_vm9, %v3102_v17  ;;  %v3103_v29 = vpack.c.bf16 %v3239_v52, %v3239_v52  ;;  %v2215_v58 = vpop.f32.mrb[11].mxu0  ;;  %v2643_v40 = vadd.f32 %v2642_v20, %v2641_v10  ;;  %v2542_v35 = vadd.f32 %v2541_v26, %v2540_v5 }
 0x215   : > { %2444 = vst.msk [vmem:[%s4382_s6 + $0x20] sm:$0xf] %vm2435_vm9, %v3100_v25  ;;  %v3101_v32 = vpack.c.bf16 %v2215_v58, %v2215_v58 }
 0x216   : > { %2447 = vst.msk [vmem:[%s4382_s6 + $0x2c] sm:$0xf] %vm2435_vm9, %v3103_v29  ;;  %v2645_v54 = vadd.f32 %v2644_v42, %v2643_v40  ;;  %v2544_v13 = vadd.f32 %v2543_v56, %v2542_v35 }
 0x217   : > { %2445 = vst.msk [vmem:[%s4382_s6 + $0x24] sm:$0xf] %vm2435_vm9, %v3101_v32 }
 0x218   : > { %v2647_v59 = vadd.f32 %v2646_v53, %v2645_v54  ;;  %v2546_v19 = vadd.f32 %v2545_v2, %v2544_v13 }
 0x21a   : > { %v2649_v14 = vadd.f32 %v2648_v48, %v2647_v59 }
 0x21d   : > { %v3192_v4 = vld [vmem:[%s4382_s6 + $0x28] sm:$0xff]  }
 0x21e   : > { %v3191_v41 = vld [vmem:[%s4382_s6 + $0x20] sm:$0xff]   ;;  %v3146_v16 = vunpack.c.l.bf16 %v3192_v4  ;;  %v3147_v52 = vunpack.c.h.bf16 %v3192_v4 }
 0x21f   : > { %v3142_v3 = vunpack.c.l.bf16 %v3191_v41  ;;  %v3143_v62 = vunpack.c.h.bf16 %v3191_v41 }
 0x220   : > { %v2613_v27 = vmul.f32 %v3146_v16, %v3146_v16  ;;  %v2551_v45 = vsel %vm733_vm3, %v3146_v16, 0.0  ;;  %v2614_v34 = vmul.f32 %v3147_v52, %v3147_v52  ;;  %v2553_v12 = vsel %vm733_vm3, %v3147_v52, 0.0 }
 0x221   : > { %v3242_v38 = vpop.f32.mrb[12].mxu0  ;;  %v2611_v1 = vmul.f32 %v3142_v3, %v3142_v3  ;;  %v2547_v61 = vsel %vm733_vm3, %v3142_v3, 0.0  ;;  %v2612_v17 = vmul.f32 %v3143_v62, %v3143_v62  ;;  %v2549_v51 = vsel %vm733_vm3, %v3143_v62, 0.0 }
 0x222   : > { %v3106_v37 = vpack.c.bf16 %v3242_v38, %v3242_v38  ;;  %v2228_v60 = vpop.f32.mrb[13].mxu0  ;;  %v2548_v57 = vadd.f32 %v2547_v61, %v2546_v19  ;;  %v2654_v36 = vsel %vm733_vm3, %v2613_v27, 0.0  ;;  %v2656_v28 = vsel %vm733_vm3, %v2614_v34, 0.0 }
 0x223   : > { %v3104_v50 = vpack.c.bf16 %v2228_v60, %v2228_v60  ;;  %v3243_v49 = vpop.f32.mrb[14].mxu0  ;;  %v2650_v7 = vsel %vm733_vm3, %v2611_v1, 0.0  ;;  %v2652_v29 = vsel %vm733_vm3, %v2612_v17, 0.0 }
 0x224   : > { %2450 = vst.msk [vmem:[%s4382_s6 + $0x38] sm:$0xf] %vm2435_vm9, %v3106_v37  ;;  %v3107_v55 = vpack.c.bf16 %v3243_v49, %v3243_v49  ;;  %v2231_v46 = vpop.f32.mrb[15].mxu0  ;;  %v2651_v21 = vadd.f32 %v2650_v7, %v2649_v14  ;;  %v2550_v25 = vadd.f32 %v2549_v51, %v2548_v57 }
 0x225   : > { %2448 = vst.msk [vmem:[%s4382_s6 + $0x30] sm:$0xf] %vm2435_vm9, %v3104_v50  ;;  %v3105_v63 = vpack.c.bf16 %v2231_v46, %v2231_v46 }
 0x226   : > { %2451 = vst.msk [vmem:[%s4382_s6 + $0x3c] sm:$0xf] %vm2435_vm9, %v3107_v55  ;;  %v2653_v0 = vadd.f32 %v2652_v29, %v2651_v21  ;;  %v2552_v15 = vadd.f32 %v2551_v45, %v2550_v25 }
 0x227   : > { %2449 = vst.msk [vmem:[%s4382_s6 + $0x34] sm:$0xf] %vm2435_vm9, %v3105_v63 }
 0x228   : > { %v2655_v18 = vadd.f32 %v2654_v36, %v2653_v0  ;;  %v2554_v10 = vadd.f32 %v2553_v12, %v2552_v15 }
 0x22a   : > { %v2657_v41 = vadd.f32 %v2656_v28, %v2655_v18 }
 0x22d   : > { %v3194_v5 = vld [vmem:[%s4382_s6 + $0x38] sm:$0xff]  }
 0x22e   : > { %v3193_v23 = vld [vmem:[%s4382_s6 + $0x30] sm:$0xff]   ;;  %v3154_v26 = vunpack.c.l.bf16 %v3194_v5  ;;  %v3155_v9 = vunpack.c.h.bf16 %v3194_v5 }
 0x22f   : > { %v3150_v58 = vunpack.c.l.bf16 %v3193_v23  ;;  %v3151_v22 = vunpack.c.h.bf16 %v3193_v23 }
 0x230   : > { %v2617_v42 = vmul.f32 %v3154_v26, %v3154_v26  ;;  %v2559_v54 = vsel %vm733_vm3, %v3154_v26, 0.0  ;;  %v2618_v13 = vmul.f32 %v3155_v9, %v3155_v9  ;;  %v2561_v4 = vsel %vm733_vm3, %v3155_v9, 0.0 }
 0x231   : > { %v3246_v30 = vpop.f32.mrb[0].mxu1  ;;  %v2615_v24 = vmul.f32 %v3150_v58, %v3150_v58  ;;  %v2555_v20 = vsel %vm733_vm3, %v3150_v58, 0.0  ;;  %v2616_v38 = vmul.f32 %v3151_v22, %v3151_v22  ;;  %v2557_v35 = vsel %vm733_vm3, %v3151_v22, 0.0 }
 0x232   : > { %v3110_v47 = vpack.c.bf16 %v3246_v30, %v3246_v30  ;;  %v2244_v32 = vpop.f32.mrb[1].mxu1  ;;  %v2556_v40 = vadd.f32 %v2555_v20, %v2554_v10  ;;  %v2662_v31 = vsel %vm733_vm3, %v2617_v42, 0.0  ;;  %v2664_v16 = vsel %vm733_vm3, %v2618_v13, 0.0 }
 0x233   : > { %v3108_v8 = vpack.c.bf16 %v2244_v32, %v2244_v32  ;;  %v3247_v33 = vpop.f32.mrb[2].mxu1  ;;  %v2658_v39 = vsel %vm733_vm3, %v2615_v24, 0.0  ;;  %v2660_v3 = vsel %vm733_vm3, %v2616_v38, 0.0 }
 0x234   : > { %2454 = vst.msk [vmem:[%s4382_s6 + $0x48] sm:$0xf] %vm2435_vm9, %v3110_v47  ;;  %v3111_v44 = vpack.c.bf16 %v3247_v33, %v3247_v33  ;;  %v2247_v11 = vpop.f32.mrb[3].mxu1  ;;  %v2659_v43 = vadd.f32 %v2658_v39, %v2657_v41  ;;  %v2558_v37 = vadd.f32 %v2557_v35, %v2556_v40 }
 0x235   : > { %2452 = vst.msk [vmem:[%s4382_s6 + $0x40] sm:$0xf] %vm2435_vm9, %v3108_v8  ;;  %v3109_v6 = vpack.c.bf16 %v2247_v11, %v2247_v11 }
 0x236   : > { %2455 = vst.msk [vmem:[%s4382_s6 + $0x4c] sm:$0xf] %vm2435_vm9, %v3111_v44  ;;  %v2661_v49 = vadd.f32 %v2660_v3, %v2659_v43  ;;  %v2560_v46 = vadd.f32 %v2559_v54, %v2558_v37 }
 0x237   : > { %2453 = vst.msk [vmem:[%s4382_s6 + $0x44] sm:$0xf] %vm2435_vm9, %v3109_v6 }
 0x238   : > { %v2663_v2 = vadd.f32 %v2662_v31, %v2661_v49  ;;  %v2562_v14 = vadd.f32 %v2561_v4, %v2560_v46 }
 0x23a   : > { %v2665_v23 = vadd.f32 %v2664_v16, %v2663_v2 }
 0x23d   : > { %v3196_v57 = vld [vmem:[%s4382_s6 + $0x48] sm:$0xff]  }
 0x23e   : > { %v3195_v60 = vld [vmem:[%s4382_s6 + $0x40] sm:$0xff]   ;;  %v3162_v51 = vunpack.c.l.bf16 %v3196_v57  ;;  %v3163_v58 = vunpack.c.h.bf16 %v3196_v57 }
 0x23f   : > { %v3158_v50 = vunpack.c.l.bf16 %v3195_v60  ;;  %v3159_v19 = vunpack.c.h.bf16 %v3195_v60 }
 0x240   : > { %v2621_v30 = vmul.f32 %v3162_v51, %v3162_v51  ;;  %v2567_v45 = vsel %vm733_vm3, %v3162_v51, 0.0  ;;  %v2622_v15 = vmul.f32 %v3163_v58, %v3163_v58  ;;  %v2569_v18 = vsel %vm733_vm3, %v3163_v58, 0.0 }
 0x241   : > { %v3250_v55 = vpop.f32.mrb[4].mxu1  ;;  %v2619_v53 = vmul.f32 %v3158_v50, %v3158_v50  ;;  %v2563_v48 = vsel %vm733_vm3, %v3158_v50, 0.0  ;;  %v2620_v25 = vmul.f32 %v3159_v19, %v3159_v19  ;;  %v2565_v27 = vsel %vm733_vm3, %v3159_v19, 0.0 }
 0x242   : > { %v3114_v56 = vpack.c.bf16 %v3250_v55, %v3250_v55  ;;  %v2260_v63 = vpop.f32.mrb[5].mxu1  ;;  %v2564_v21 = vadd.f32 %v2563_v48, %v2562_v14  ;;  %v2670_v44 = vsel %vm733_vm3, %v2621_v30, 0.0  ;;  %v2672_v41 = vsel %vm733_vm3, %v2622_v15, 0.0 }
 0x243   : > { %v3112_v1 = vpack.c.bf16 %v2260_v63, %v2260_v63  ;;  %v3251_v59 = vpop.f32.mrb[6].mxu1  ;;  %v2666_v17 = vsel %vm733_vm3, %v2619_v53, 0.0  ;;  %v2668_v0 = vsel %vm733_vm3, %v2620_v25, 0.0 }
 0x244   : > { %2458 = vst.msk [vmem:[%s4382_s6 + $0x58] sm:$0xf] %vm2435_vm9, %v3114_v56  ;;  %v3115_v62 = vpack.c.bf16 %v3251_v59, %v3251_v59  ;;  %v2263_v61 = vpop.f32.mrb[7].mxu1  ;;  %v2667_v52 = vadd.f32 %v2666_v17, %v2665_v23  ;;  %v2566_v29 = vadd.f32 %v2565_v27, %v2564_v21 }
 0x245   : > { %2456 = vst.msk [vmem:[%s4382_s6 + $0x50] sm:$0xf] %vm2435_vm9, %v3112_v1  ;;  %v3113_v7 = vpack.c.bf16 %v2263_v61, %v2263_v61 }
 0x246   : > { %2459 = vst.msk [vmem:[%s4382_s6 + $0x5c] sm:$0xf] %vm2435_vm9, %v3115_v62  ;;  %v2669_v47 = vadd.f32 %v2668_v0, %v2667_v52  ;;  %v2568_v33 = vadd.f32 %v2567_v45, %v2566_v29 }
 0x247   : > { %2457 = vst.msk [vmem:[%s4382_s6 + $0x54] sm:$0xf] %vm2435_vm9, %v3113_v7 }
 0x248   : > { %v2671_v36 = vadd.f32 %v2670_v44, %v2669_v47  ;;  %v2570_v28 = vadd.f32 %v2569_v18, %v2568_v33 }
 0x24a   : > { %v2673_v35 = vadd.f32 %v2672_v41, %v2671_v36 }
 0x24d   : > { %v3198_v10 = vld [vmem:[%s4382_s6 + $0x58] sm:$0xff]  }
 0x24e   : > { %v3197_v32 = vld [vmem:[%s4382_s6 + $0x50] sm:$0xff]   ;;  %v3170_v37 = vunpack.c.l.bf16 %v3198_v10  ;;  %v3171_v50 = vunpack.c.h.bf16 %v3198_v10 }
 0x24f   : > { %v3166_v8 = vunpack.c.l.bf16 %v3197_v32  ;;  %v3167_v12 = vunpack.c.h.bf16 %v3197_v32 }
 0x250   : > { %v2625_v49 = vmul.f32 %v3170_v37, %v3170_v37  ;;  %v2575_v46 = vsel %vm733_vm3, %v3170_v37, 0.0  ;;  %v2626_v13 = vmul.f32 %v3171_v50, %v3171_v50  ;;  %v2577_v59 = vsel %vm733_vm3, %v3171_v50, 0.0 }
 0x251   : > { %v2623_v11 = vmul.f32 %v3166_v8, %v3166_v8  ;;  %v3254_v34 = vpop.f32.mrb[8].mxu1  ;;  %v2571_v22 = vsel %vm733_vm3, %v3166_v8, 0.0  ;;  %v2624_v60 = vmul.f32 %v3167_v12, %v3167_v12  ;;  %v2573_v42 = vsel %vm733_vm3, %v3167_v12, 0.0 }
 0x252   : > { %v3118_v24 = vpack.c.bf16 %v3254_v34, %v3254_v34  ;;  %v2276_v6 = vpop.f32.mrb[9].mxu1  ;;  %v2572_v43 = vadd.f32 %v2571_v22, %v2570_v28  ;;  %v2678_v31 = vsel %vm733_vm3, %v2625_v49, 0.0  ;;  %v2680_v14 = vsel %vm733_vm3, %v2626_v13, 0.0 }
 0x253   : > { %v3116_v20 = vpack.c.bf16 %v2276_v6, %v2276_v6  ;;  %v3255_v5 = vpop.f32.mrb[10].mxu1  ;;  %v2674_v26 = vsel %vm733_vm3, %v2623_v11, 0.0  ;;  %v2676_v54 = vsel %vm733_vm3, %v2624_v60, 0.0 }
 0x254   : > { %2462 = vst.msk [vmem:[%s4382_s6 + $0x68] sm:$0xf] %vm2435_vm9, %v3118_v24  ;;  %v3119_v39 = vpack.c.bf16 %v3255_v5, %v3255_v5  ;;  %v2279_v40 = vpop.f32.mrb[11].mxu1  ;;  %v2675_v9 = vadd.f32 %v2674_v26, %v2673_v35  ;;  %v2574_v3 = vadd.f32 %v2573_v42, %v2572_v43 }
 0x255   : > { %2460 = vst.msk [vmem:[%s4382_s6 + $0x60] sm:$0xf] %vm2435_vm9, %v3116_v20  ;;  %v3117_v38 = vpack.c.bf16 %v2279_v40, %v2279_v40 }
 0x256   : > { %2463 = vst.msk [vmem:[%s4382_s6 + $0x6c] sm:$0xf] %vm2435_vm9, %v3119_v39  ;;  %v2677_v55 = vadd.f32 %v2676_v54, %v2675_v9  ;;  %v2576_v56 = vadd.f32 %v2575_v46, %v2574_v3 }
 0x257   : > { %2461 = vst.msk [vmem:[%s4382_s6 + $0x64] sm:$0xf] %vm2435_vm9, %v3117_v38 }
 0x258   : > { %v2679_v1 = vadd.f32 %v2678_v31, %v2677_v55  ;;  %v2578_v48 = vadd.f32 %v2577_v59, %v2576_v56 }
 0x25a   : > { %v2681_v51 = vadd.f32 %v2680_v14, %v2679_v1 }
 0x25d   : > { %v3200_v19 = vld [vmem:[%s4382_s6 + $0x68] sm:$0xff]  }
 0x25e   : > { %v3199_v63 = vld [vmem:[%s4382_s6 + $0x60] sm:$0xff]   ;;  %v3178_v27 = vunpack.c.l.bf16 %v3200_v19  ;;  %v3179_v47 = vunpack.c.h.bf16 %v3200_v19 }
 0x25f   : > { %v3174_v53 = vunpack.c.l.bf16 %v3199_v63  ;;  %v3175_v2 = vunpack.c.h.bf16 %v3199_v63 }
 0x260   : > { %v2629_v45 = vmul.f32 %v3178_v27, %v3178_v27  ;;  %v2583_v15 = vsel %vm733_vm3, %v3178_v27, 0.0  ;;  %v2630_v44 = vmul.f32 %v3179_v47, %v3179_v47  ;;  %v2585_v18 = vsel %vm733_vm3, %v3179_v47, 0.0 }
 0x261   : > { %v2579_v62 = vsel %vm733_vm3, %v3174_v53, 0.0  ;;  %v2627_v61 = vmul.f32 %v3174_v53, %v3174_v53  ;;  %v3258_v4 = vpop.f32.mrb[12].mxu1  ;;  %v2628_v29 = vmul.f32 %v3175_v2, %v3175_v2  ;;  %v2581_v0 = vsel %vm733_vm3, %v3175_v2, 0.0 }
 0x262   : > { %v3122_v7 = vpack.c.bf16 %v3258_v4, %v3258_v4  ;;  %v2292_v57 = vpop.f32.mrb[13].mxu1  ;;  %v2580_v23 = vadd.f32 %v2579_v62, %v2578_v48  ;;  %v2686_v34 = vsel %vm733_vm3, %v2629_v45, 0.0  ;;  %v2688_v5 = vsel %vm733_vm3, %v2630_v44, 0.0 }
 0x263   : > { %v2682_v16 = vsel %vm733_vm3, %v2627_v61, 0.0  ;;  %v3120_v17 = vpack.c.bf16 %v2292_v57, %v2292_v57  ;;  %v3259_v21 = vpop.f32.mrb[14].mxu1  ;;  %v2684_v8 = vsel %vm733_vm3, %v2628_v29, 0.0 }
 0x264   : > { %2466 = vst.msk [vmem:[%s4382_s6 + $0x78] sm:$0xf] %vm2435_vm9, %v3122_v7  ;;  %v3123_v25 = vpack.c.bf16 %v3259_v21, %v3259_v21  ;;  %v2295_v52 = vpop.f32.mrb[15].mxu1  ;;  %v2683_v30 = vadd.f32 %v2682_v16, %v2681_v51  ;;  %v2582_v32 = vadd.f32 %v2581_v0, %v2580_v23 }
 0x265   : > { %2464 = vst.msk [vmem:[%s4382_s6 + $0x70] sm:$0xf] %vm2435_vm9, %v3120_v17  ;;  %v3121_v58 = vpack.c.bf16 %v2295_v52, %v2295_v52 }
 0x266   : > { %2467 = vst.msk [vmem:[%s4382_s6 + $0x7c] sm:$0xf] %vm2435_vm9, %v3123_v25  ;;  %v2685_v33 = vadd.f32 %v2684_v8, %v2683_v30  ;;  %v2584_v11 = vadd.f32 %v2583_v15, %v2582_v32 }
 0x267   : > { %2465 = vst.msk [vmem:[%s4382_s6 + $0x74] sm:$0xf] %vm2435_vm9, %v3121_v58 }
 0x268   : > { %v2687_v24 = vadd.f32 %v2686_v34, %v2685_v33  ;;  %v2586_v10 = vadd.f32 %v2585_v18, %v2584_v11 }
 0x26a   : > { %v2689_v38 = vadd.f32 %v2688_v5, %v2687_v24 }
 0x26d   : > { %v3202_v36 = vld [vmem:[%s4382_s6 + $0x78] sm:$0xff]  }
 0x26e   : > { %v3201_v6 = vld [vmem:[%s4382_s6 + $0x70] sm:$0xff]   ;;  %v3186_v12 = vunpack.c.l.bf16 %v3202_v36  ;;  %v3187_v28 = vunpack.c.h.bf16 %v3202_v36 }
 0x26f   : > { %v3182_v22 = vunpack.c.l.bf16 %v3201_v6  ;;  %v3183_v20 = vunpack.c.h.bf16 %v3201_v6 }
 0x270   : > { %v2633_v43 = vmul.f32 %v3186_v12, %v3186_v12  ;;  %v2591_v42 = vsel %vm733_vm3, %v3186_v12, 0.0  ;;  %v2634_v3 = vmul.f32 %v3187_v28, %v3187_v28  ;;  %v2593_v55 = vsel %vm733_vm3, %v3187_v28, 0.0 }
 0x271   : > { %v2587_v39 = vsel %vm733_vm3, %v3182_v22, 0.0  ;;  %v2631_v40 = vmul.f32 %v3182_v22, %v3182_v22  ;;  %v2632_v41 = vmul.f32 %v3183_v20, %v3183_v20  ;;  %v2589_v35 = vsel %vm733_vm3, %v3183_v20, 0.0 }
 0x272   : > { %v2588_v26 = vadd.f32 %v2587_v39, %v2586_v10  ;;  %v2694_v46 = vsel %vm733_vm3, %v2633_v43, 0.0  ;;  %v2696_v13 = vsel %vm733_vm3, %v2634_v3, 0.0 }
 0x273   : > { %v2690_v37 = vsel %vm733_vm3, %v2631_v40, 0.0  ;;  %v2692_v50 = vsel %vm733_vm3, %v2632_v41, 0.0 }
 0x274   : > { %v2590_v60 = vadd.f32 %v2589_v35, %v2588_v26  ;;  %v2691_v9 = vadd.f32 %v2690_v37, %v2689_v38 }
 0x276   : > { %v2592_v49 = vadd.f32 %v2591_v42, %v2590_v60  ;;  %v2693_v54 = vadd.f32 %v2692_v50, %v2691_v9 }
 0x278   : > { %v2594_v56 = vadd.f32 %v2593_v55, %v2592_v49  ;;  %v2695_v63 = vadd.f32 %v2694_v46, %v2693_v54 }
 0x27a   : > { %v2595_v31 = vrot.slane %v2594_v56, 4  ;;  %v2697_v53 = vadd.f32 %v2696_v13, %v2695_v63 }
 0x27c   : > { %v2596_v1 = vadd.f32 %v2595_v31, %v2594_v56  ;;  %v2698_v59 = vrot.slane %v2697_v53, 4 }
 0x27e   : > { %v2597_v2 = vrot.slane %v2596_v1, 2  ;;  %v2699_v62 = vadd.f32 %v2698_v59, %v2697_v53 }
 0x280   : > { %v2598_v61 = vadd.f32 %v2597_v2, %v2596_v1  ;;  %v2700_v4 = vrot.slane %v2699_v62, 2 }
 0x282   : > { %v2599_v19 = vrot.slane %v2598_v61, 1  ;;  %v2701_v48 = vadd.f32 %v2700_v4, %v2699_v62 }
 0x284   : > { %v2600_v7 = vadd.f32 %v2599_v19, %v2598_v61  ;;  %v2702_v57 = vrot.slane %v2701_v48, 1 }
 0x286   : > { %2602 = vst.msk [vmem:[%s212_s10] sm:$0x1] %vm2601_vm10, %v2600_v7  ;;  %v2703_v14 = vadd.f32 %v2702_v57, %v2701_v48 }
 0x288   : > { %2704 = vst.msk [vmem:[%s212_s10 + $0x1] sm:$0x1] %vm2601_vm10, %v2703_v14 }
 0x289 PF: > { %s14_s14 = sadd.s32 1, %s3447_s14   ;;  %s4545_s12 = smov %s3443_s13 }
 0x28a   : > { %p11_p5 = scmp.ge.s32.totalorder %s14_s14, 4   ;;  %s4546_s13 = smov %s4548_s15 }
 0x28c   :  { %13 = sbr.rel (!%p11_p5) target bundleno = 2 (0x2), region = 73 }

</bundles_post_ra>
